<compile_context>
chip_gen: v6e
topology: v6e:2x2x1
jax: 0.10.0
libtpu: 0.0.40
codegen_flags: <defaults>
</compile_context>

<pallas_src>
import functools

import jax
import jax.numpy as jnp
from jax.experimental import pallas as pl
from jax.experimental.pallas import tpu as pltpu

LANE = 128  # TPU lane width; n_classes is padded up to this for a lane-dense output


# ---------------------------------------------------------------------------
# Fused kernel (one batch tile):
#   conv2x2(s=2) + BN2d + ReLU + Linear + BN1d + ReLU + Linear + sigmoid
# ---------------------------------------------------------------------------
def _unet_disc_kernel(x_ref, wc_ref, bc_ref, w1_ref, b1_ref, w2_ref, b2_ref, o_ref):
    # x_ref : (TM, 4*C) bf16  im2col of the 2x2/stride-2 conv (single output position)
    # wc_ref: (4*C, C)  bf16  conv weight, (ci,kh,kw)-major rows, BN2d scale folded in
    # bc_ref: (1, C)    f32   folded BN2d shift (conv bias folded in)
    # w1_ref: (C, C)    bf16  Linear1 weight^T with BN1d scale folded into columns
    # b1_ref: (1, C)    f32   folded BN1d shift (linear1 bias folded in)
    # w2_ref: (C, Kp)   bf16  Linear2 weight^T, zero-padded to Kp = 128 lanes
    # b2_ref: (1, Kp)   f32
    # o_ref : (TM, Kp)  f32   sigmoid(logits)
    h = jnp.dot(x_ref[...], wc_ref[...], preferred_element_type=jnp.float32)
    h = jnp.maximum(h + bc_ref[...], 0.0)                      # BN2d shift + ReLU
    # Flatten of (TM, C, 1, 1) is already (TM, C); Dropout in eval mode = identity.
    h = jnp.dot(h.astype(jnp.bfloat16), w1_ref[...],
                preferred_element_type=jnp.float32)
    h = jnp.maximum(h + b1_ref[...], 0.0)                      # BN1d shift + ReLU
    logit = jnp.dot(h.astype(jnp.bfloat16), w2_ref[...],
                    preferred_element_type=jnp.float32) + b2_ref[...]
    o_ref[...] = (1.0 / (1.0 + jnp.exp(-logit))).astype(o_ref.dtype)   # sigmoid (f32)


# ---------------------------------------------------------------------------
# Wrapper: batch grid, resident weights, lane-dense padded output
# ---------------------------------------------------------------------------
def unet_discriminator_forward(x_nchw, params, *, n_classes, tm=256):
    """x_nchw: (N, C, 2, 2) float32 (PyTorch layout). Returns sigmoid (N, n_classes)."""
    N, C, H, W = x_nchw.shape
    assert (H, W) == (2, 2), "Flatten -> Linear(C, C) requires a 2x2 spatial input"
    assert tm % 8 == 0, "M tile must be sublane-aligned"
    Kp = params["w2"].shape[-1]

    # im2col for the single 2x2/stride-2 output position == contiguous NCHW flatten.
    x_flat = x_nchw.reshape(N, C * H * W).astype(jnp.bfloat16)

    # Pad the batch to a multiple of the M tile (rows are independent).
    num_tiles = (N + tm - 1) // tm
    n_pad = num_tiles * tm
    if n_pad != N:
        x_flat = jnp.pad(x_flat, ((0, n_pad - N), (0, 0)))

    wc, bc = params["wc"], params["bc"]
    w1, b1 = params["w1"], params["b1"]
    w2, b2 = params["w2"], params["b2"]

    # VMEM budget: single-buffered weights + double-buffered streamed x / out tiles.
    weight_bytes = sum(int(a.size) * a.dtype.itemsize for a in (wc, bc, w1, b1, w2, b2))
    stream_bytes = 2 * (tm * 4 * C * 2 + tm * Kp * 4)
    vmem_limit = min(int(1.5 * (weight_bytes + stream_bytes)) + (8 << 20), 60 << 20)

    flops = 2 * n_pad * (4 * C * C + C * C + C * Kp)
    bytes_accessed = 2 * int(x_flat.size) + weight_bytes + 4 * n_pad * Kp

    def _weight_spec(shape):
        # Constant block index across the batch grid -> keep a single resident copy
        # in VMEM instead of double-buffering it.
        return pl.BlockSpec(shape, lambda i: (0, 0),
                            memory_space=pltpu.MemorySpace.VMEM,
                            pipeline_mode=pl.Buffered(1))

    out_padded = pl.pallas_call(
        _unet_disc_kernel,
        grid=(num_tiles,),
        in_specs=[
            pl.BlockSpec((tm, 4 * C), lambda i: (i, 0),
                         memory_space=pltpu.MemorySpace.VMEM),
            _weight_spec(wc.shape), _weight_spec(bc.shape),
            _weight_spec(w1.shape), _weight_spec(b1.shape),
            _weight_spec(w2.shape), _weight_spec(b2.shape),
        ],
        out_specs=pl.BlockSpec((tm, Kp), lambda i: (i, 0),
                               memory_space=pltpu.MemorySpace.VMEM),
        out_shape=jax.ShapeDtypeStruct((n_pad, Kp), jnp.float32),
        compiler_params=pltpu.CompilerParams(
            dimension_semantics=("parallel",),      # M tiles split across TCs on v7x
            vmem_limit_bytes=vmem_limit),
        cost_estimate=pl.CostEstimate(
            flops=flops, transcendentals=n_pad * Kp, bytes_accessed=bytes_accessed),
    )(x_flat, wc, bc, w1, b1, w2, b2)

    return out_padded[:N, :n_classes]


# ---------------------------------------------------------------------------
# Parameter construction (deterministic, synthetic, torch layouts) + BN folding
# ---------------------------------------------------------------------------
def make_raw_params(key, n_channels, n_classes):
    """Raw parameters in PyTorch layouts (conv OIHW, linear (out, in), BN stats)."""
    C = n_channels
    ks = jax.random.split(key, 14)
    w_conv = jax.random.normal(ks[0], (C, C, 2, 2), jnp.float32) / jnp.sqrt(4.0 * C)
    b_conv = 0.05 * jax.random.normal(ks[1], (C,), jnp.float32)
    g1 = 1.0 + 0.1 * jax.random.normal(ks[2], (C,), jnp.float32)
    be1 = 0.1 * jax.random.normal(ks[3], (C,), jnp.float32)
    m1 = 0.1 * jax.random.normal(ks[4], (C,), jnp.float32)
    v1 = 1.0 + 0.1 * jnp.abs(jax.random.normal(ks[5], (C,), jnp.float32))
    w_l1 = jax.random.normal(ks[6], (C, C), jnp.float32) / jnp.sqrt(1.0 * C)
    b_l1 = 0.05 * jax.random.normal(ks[7], (C,), jnp.float32)
    g2 = 1.0 + 0.1 * jax.random.normal(ks[8], (C,), jnp.float32)
    be2 = 0.1 * jax.random.normal(ks[9], (C,), jnp.float32)
    m2 = 0.1 * jax.random.normal(ks[10], (C,), jnp.float32)
    v2 = 1.0 + 0.1 * jnp.abs(jax.random.normal(ks[11], (C,), jnp.float32))
    w_l2 = jax.random.normal(ks[12], (n_classes, C), jnp.float32) / jnp.sqrt(1.0 * C)
    b_l2 = 0.05 * jax.random.normal(ks[13], (n_classes,), jnp.float32)
    return dict(w_conv=w_conv, b_conv=b_conv, g1=g1, be1=be1, m1=m1, v1=v1,
                w_l1=w_l1, b_l1=b_l1, g2=g2, be2=be2, m2=m2, v2=v2,
                w_l2=w_l2, b_l2=b_l2)


def fold_params(raw, eps=1e-5):
    """Eval-mode BN folding, bf16 matmul weights, lane-dense padding of n_classes."""
    C = raw["w_conv"].shape[0]
    n_classes = raw["w_l2"].shape[0]
    k_pad = max(LANE, ((n_classes + LANE - 1) // LANE) * LANE)

    s1 = raw["g1"] / jnp.sqrt(raw["v1"] + eps)                     # BN2d scale
    bc = raw["be1"] + (raw["b_conv"] - raw["m1"]) * s1             # BN2d shift (+conv bias)
    s2 = raw["g2"] / jnp.sqrt(raw["v2"] + eps)                     # BN1d scale
    b1 = raw["be2"] + (raw["b_l1"] - raw["m2"]) * s2               # BN1d shift (+lin1 bias)

    # Conv weight (Cout, Cin, 2, 2) -> im2col matrix (4*C, Cout); row order
    # (ci, kh, kw)-major matches the contiguous NCHW flatten of the 2x2 input.
    # BN scales are folded into the output columns so the epilogue is add + ReLU.
    wc = jnp.transpose(raw["w_conv"].reshape(C, 4 * C)) * s1[None, :]
    w1 = jnp.transpose(raw["w_l1"]) * s2[None, :]
    w2 = jnp.zeros((C, k_pad), jnp.float32).at[:, :n_classes].set(
        jnp.transpose(raw["w_l2"]))
    b2 = jnp.zeros((k_pad,), jnp.float32).at[:n_classes].set(raw["b_l2"])

    return dict(
        wc=wc.astype(jnp.bfloat16), bc=bc.reshape(1, C),
        w1=w1.astype(jnp.bfloat16), b1=b1.reshape(1, C),
        w2=w2.astype(jnp.bfloat16), b2=b2.reshape(1, k_pad),
    )


# Pure-JAX eval-mode reference built from the UNFOLDED torch-layout parameters,
# so BN-folding / im2col-layout transcription bugs would be caught.
def unet_discriminator_ref(x_nchw, raw, eps=1e-5):
    y = jnp.einsum("ncij,ocij->no", x_nchw, raw["w_conv"]) + raw["b_conv"]   # conv 2x2/s2
    y = (y - raw["m1"]) / jnp.sqrt(raw["v1"] + eps) * raw["g1"] + raw["be1"]  # BN2d
    y = jnp.maximum(y, 0.0)                                                   # ReLU
    # Flatten (N, C, 1, 1) -> (N, C); Dropout (eval) = identity
    y = y @ raw["w_l1"].T + raw["b_l1"]                                       # Linear
    y = (y - raw["m2"]) / jnp.sqrt(raw["v2"] + eps) * raw["g2"] + raw["be2"]  # BN1d
    y = jnp.maximum(y, 0.0)                                                   # ReLU
    logit = y @ raw["w_l2"].T + raw["b_l2"]                                   # Linear
    return jax.nn.sigmoid(logit)


if __name__ == "__main__":
    key = jax.random.PRNGKey(0)
    k_x, k_p = jax.random.split(key)

    # Small stand-in for (n_channels=1024, n_classes=1): C=128 keeps the channel dim
    # lane-dense; N=512 with TM=256 exercises a 2-step streamed batch grid. Spatial
    # must be 2x2 for the module's Flatten -> Linear(C, C) to be well-formed.
    N, C, N_CLASSES, TM = 512, 128, 1, 256
    x = jax.random.normal(k_x, (N, C, 2, 2), jnp.float32)
    raw = make_raw_params(k_p, C, N_CLASSES)
    params = fold_params(raw)

    fwd = jax.jit(functools.partial(unet_discriminator_forward,
                                    n_classes=N_CLASSES, tm=TM))
    out = jax.block_until_ready(fwd(x, params))

    assert out.shape == (N, N_CLASSES), out.shape
    assert out.dtype == jnp.float32
    assert bool(jnp.all(jnp.isfinite(out)))

    ref = jax.block_until_ready(jax.jit(unet_discriminator_ref)(x, raw))
    max_err = float(jnp.max(jnp.abs(out - ref)))
    # bf16 matmul operands vs f32 reference -> relaxed tolerance.
    assert jnp.allclose(out, ref, atol=3e-2, rtol=3e-2), max_err

    print("KERNEL_OK")
</pallas_src>

<mosaic_0001>
module attributes {stable_mosaic.version = 11 : i64} {
  func.func @_unet_disc_kernel(%arg0: i32, %arg1: memref<256x512xbf16, #tpu.memory_space<vmem>>, %arg2: memref<512x128xbf16, #tpu.memory_space<vmem>>, %arg3: memref<1x128xf32, #tpu.memory_space<vmem>>, %arg4: memref<128x128xbf16, #tpu.memory_space<vmem>>, %arg5: memref<1x128xf32, #tpu.memory_space<vmem>>, %arg6: memref<128x128xbf16, #tpu.memory_space<vmem>>, %arg7: memref<1x128xf32, #tpu.memory_space<vmem>>, %arg8: memref<256x128xf32, #tpu.memory_space<vmem>>) attributes {dimension_semantics = [#tpu.dimension_semantics<parallel>], iteration_bounds = array<i64: 2>, scalar_prefetch = 0 : i64, scratch_operands = 0 : i64, tpu.core_type = #tpu.core_type<tc>, window_params = [{transform_indices = @transform_0, window_bounds = array<i64: 256, 512>}, {pipeline_mode = #tpu.pipeline_mode<synchronous>, transform_indices = @transform_1, window_bounds = array<i64: 512, 128>}, {pipeline_mode = #tpu.pipeline_mode<synchronous>, transform_indices = @transform_2, window_bounds = array<i64: 1, 128>}, {pipeline_mode = #tpu.pipeline_mode<synchronous>, transform_indices = @transform_3, window_bounds = array<i64: 128, 128>}, {pipeline_mode = #tpu.pipeline_mode<synchronous>, transform_indices = @transform_4, window_bounds = array<i64: 1, 128>}, {pipeline_mode = #tpu.pipeline_mode<synchronous>, transform_indices = @transform_5, window_bounds = array<i64: 128, 128>}, {pipeline_mode = #tpu.pipeline_mode<synchronous>, transform_indices = @transform_6, window_bounds = array<i64: 1, 128>}, {transform_indices = @transform_7, window_bounds = array<i64: 256, 128>}]} {
    %c0 = arith.constant 0 : index
    %c0_0 = arith.constant 0 : index
    %0 = vector.load %arg1[%c0, %c0_0] : memref<256x512xbf16, #tpu.memory_space<vmem>>, vector<256x512xbf16>
    %c0_1 = arith.constant 0 : index
    %c0_2 = arith.constant 0 : index
    %1 = vector.load %arg2[%c0_1, %c0_2] : memref<512x128xbf16, #tpu.memory_space<vmem>>, vector<512x128xbf16>
    %cst = arith.constant dense<0.000000e+00> : vector<256x128xf32>
    %2 = tpu.matmul %0, %1, %cst {dimension_numbers = #tpu.dot_dimension_numbers<[1], [0], [0], [1], [0, 0, 1, 1], [], []>} : vector<256x512xbf16>, vector<512x128xbf16>, vector<256x128xf32> -> vector<256x128xf32>
    %c0_3 = arith.constant 0 : index
    %c0_4 = arith.constant 0 : index
    %3 = vector.load %arg3[%c0_3, %c0_4] : memref<1x128xf32, #tpu.memory_space<vmem>>, vector<1x128xf32>
    %4 = vector.broadcast %3 : vector<1x128xf32> to vector<256x128xf32>
    %5 = arith.addf %2, %4 : vector<256x128xf32>
    %cst_5 = arith.constant 0.000000e+00 : f32
    %6 = vector.broadcast %cst_5 : f32 to vector<256x128xf32>
    %7 = arith.maximumf %5, %6 : vector<256x128xf32>
    %8 = arith.truncf %7 : vector<256x128xf32> to vector<256x128xbf16>
    %c0_6 = arith.constant 0 : index
    %c0_7 = arith.constant 0 : index
    %9 = vector.load %arg4[%c0_6, %c0_7] : memref<128x128xbf16, #tpu.memory_space<vmem>>, vector<128x128xbf16>
    %cst_8 = arith.constant dense<0.000000e+00> : vector<256x128xf32>
    %10 = tpu.matmul %8, %9, %cst_8 {dimension_numbers = #tpu.dot_dimension_numbers<[1], [0], [0], [1], [0, 0, 1, 1], [], []>} : vector<256x128xbf16>, vector<128x128xbf16>, vector<256x128xf32> -> vector<256x128xf32>
    %c0_9 = arith.constant 0 : index
    %c0_10 = arith.constant 0 : index
    %11 = vector.load %arg5[%c0_9, %c0_10] : memref<1x128xf32, #tpu.memory_space<vmem>>, vector<1x128xf32>
    %12 = vector.broadcast %11 : vector<1x128xf32> to vector<256x128xf32>
    %13 = arith.addf %10, %12 : vector<256x128xf32>
    %cst_11 = arith.constant 0.000000e+00 : f32
    %14 = vector.broadcast %cst_11 : f32 to vector<256x128xf32>
    %15 = arith.maximumf %13, %14 : vector<256x128xf32>
    %16 = arith.truncf %15 : vector<256x128xf32> to vector<256x128xbf16>
    %c0_12 = arith.constant 0 : index
    %c0_13 = arith.constant 0 : index
    %17 = vector.load %arg6[%c0_12, %c0_13] : memref<128x128xbf16, #tpu.memory_space<vmem>>, vector<128x128xbf16>
    %cst_14 = arith.constant dense<0.000000e+00> : vector<256x128xf32>
    %18 = tpu.matmul %16, %17, %cst_14 {dimension_numbers = #tpu.dot_dimension_numbers<[1], [0], [0], [1], [0, 0, 1, 1], [], []>} : vector<256x128xbf16>, vector<128x128xbf16>, vector<256x128xf32> -> vector<256x128xf32>
    %c0_15 = arith.constant 0 : index
    %c0_16 = arith.constant 0 : index
    %19 = vector.load %arg7[%c0_15, %c0_16] : memref<1x128xf32, #tpu.memory_space<vmem>>, vector<1x128xf32>
    %20 = vector.broadcast %19 : vector<1x128xf32> to vector<256x128xf32>
    %21 = arith.addf %18, %20 : vector<256x128xf32>
    %cst_17 = arith.constant 0.000000e+00 : f32
    %22 = vector.broadcast %cst_17 : f32 to vector<256x128xf32>
    %23 = arith.subf %22, %21 : vector<256x128xf32>
    %24 = math.exp %23 : vector<256x128xf32>
    %cst_18 = arith.constant 1.000000e+00 : f32
    %25 = vector.broadcast %cst_18 : f32 to vector<256x128xf32>
    %26 = arith.addf %25, %24 : vector<256x128xf32>
    %cst_19 = arith.constant 1.000000e+00 : f32
    %27 = vector.broadcast %cst_19 : f32 to vector<256x128xf32>
    %28 = arith.divf %27, %26 : vector<256x128xf32>
    %c0_20 = arith.constant 0 : index
    %c0_21 = arith.constant 0 : index
    %29 = vector.load %arg8[%c0_20, %c0_21] : memref<256x128xf32, #tpu.memory_space<vmem>>, vector<256x128xf32>
    tpu.vector_store %arg8[%c0_20, %c0_21], %28 {strides = array<i32>} : memref<256x128xf32, #tpu.memory_space<vmem>>, vector<256x128xf32>,
    return
  }
  func.func @transform_0(%arg0: i32) -> (i32, i32) {
    %c0_i32 = arith.constant 0 : i32
    %c0_i32_0 = arith.constant 0 : i32
    return %arg0, %c0_i32 : i32, i32
  }
  func.func @transform_1(%arg0: i32) -> (i32, i32) {
    %c0_i32 = arith.constant 0 : i32
    %c0_i32_0 = arith.constant 0 : i32
    %c0_i32_1 = arith.constant 0 : i32
    return %c0_i32, %c0_i32_0 : i32, i32
  }
  func.func @transform_2(%arg0: i32) -> (i32, i32) {
    %c0_i32 = arith.constant 0 : i32
    %c0_i32_0 = arith.constant 0 : i32
    %c0_i32_1 = arith.constant 0 : i32
    return %c0_i32, %c0_i32_0 : i32, i32
  }
  func.func @transform_3(%arg0: i32) -> (i32, i32) {
    %c0_i32 = arith.constant 0 : i32
    %c0_i32_0 = arith.constant 0 : i32
    %c0_i32_1 = arith.constant 0 : i32
    return %c0_i32, %c0_i32_0 : i32, i32
  }
  func.func @transform_4(%arg0: i32) -> (i32, i32) {
    %c0_i32 = arith.constant 0 : i32
    %c0_i32_0 = arith.constant 0 : i32
    %c0_i32_1 = arith.constant 0 : i32
    return %c0_i32, %c0_i32_0 : i32, i32
  }
  func.func @transform_5(%arg0: i32) -> (i32, i32) {
    %c0_i32 = arith.constant 0 : i32
    %c0_i32_0 = arith.constant 0 : i32
    %c0_i32_1 = arith.constant 0 : i32
    return %c0_i32, %c0_i32_0 : i32, i32
  }
  func.func @transform_6(%arg0: i32) -> (i32, i32) {
    %c0_i32 = arith.constant 0 : i32
    %c0_i32_0 = arith.constant 0 : i32
    %c0_i32_1 = arith.constant 0 : i32
    return %c0_i32, %c0_i32_0 : i32, i32
  }
  func.func @transform_7(%arg0: i32) -> (i32, i32) {
    %c0_i32 = arith.constant 0 : i32
    %c0_i32_0 = arith.constant 0 : i32
    return %arg0, %c0_i32 : i32, i32
  }
}

</mosaic_0001>

<bundles_post_ra>
// kernel: unet_discriminator_forward.1
= control target key start
LH: loop header
LB: loop body
LE: loop exit
PB: predicated region body
PF: predicated region fallthrough
CT: control target
= control target key end

     0   :  { %s2919_s24 = smov 0   ;;  %s3297_s0 = inlined_call_operand.vmem [shape: bf16[512,512], index: 0, kind: input, shape index: {}]   ;;  %s3298_s1 = inlined_call_operand.vmem [shape: bf16[512,128], index: 1, kind: input, shape index: {}]   ;;  %s3299_s2 = inlined_call_operand.vmem [shape: f32[1,128], index: 2, kind: input, shape index: {}]   ;;  %s3300_s3 = inlined_call_operand.vmem [shape: bf16[128,128], index: 3, kind: input, shape index: {}]   ;;  %s3301_s4 = inlined_call_operand.vmem [shape: f32[1,128], index: 4, kind: input, shape index: {}]   ;;  %s3302_s5 = inlined_call_operand.vmem [shape: bf16[128,128], index: 5, kind: input, shape index: {}]   ;;  %s3303_s6 = inlined_call_operand.vmem [shape: f32[1,128], index: 6, kind: input, shape index: {}]   ;;  %s3304_s7 = inlined_call_operand.vmem [shape: f32[512,128], index: 7, kind: output, shape index: {}]  }
   0x1 LB: > { %s2095_s25 = sadd.s32 4294967295, %s2877_s24   ;;  %p2099_p0 = scmp.ge.s32.totalorder %s2877_s24, 1  ;;  %s2877_s24 = sphi %s2919_s24, %s17_s24  }
   0x2   : > { %p239_p1 = scmp.lt.s32.totalorder %s2877_s24, 3 }
   0x4   : > { %p240_p2 = pnand %p2099_p0, %p239_p1 }
   0x5   : > { %s2100_s14 = sshll.u32 (!%p240_p2), %s2095_s25, 5 }
   0x6   : > { %243 = sbr.rel (%p240_p2) target bundleno = 817 (0x331), region = 48  ;;  %p273_p3 = scmp.lt.s32.totalorder (!%p240_p2), %s2100_s14, 63 }
   0xb   : > { %v2599_v0 = vld [vmem:[%s3298_s1 + $0x78] sm:$0xff]   ;;  %v2603_v4 = vld [vmem:[%s3298_s1 + $0x70] sm:$0xff]   ;;  %v2607_v8 = vld [vmem:[%s3298_s1 + $0x68] sm:$0xff]   ;;  %s3306_s14 = smov (!%p273_p3, %s2100_s14), 63 }
   0xc   : > { %v2600_v1 = vld [vmem:[%s3298_s1 + $0xf8] sm:$0xff]   ;;  %2223 = vmatprep.subr.bf16.mxu0 %v2599_v0  ;;  %v2604_v5 = vld [vmem:[%s3298_s1 + $0xf0] sm:$0xff]   ;;  %v2608_v9 = vld [vmem:[%s3298_s1 + $0xe8] sm:$0xff]   ;;  %s2222_s16 = sshll.u32 %s3306_s14, 4  ;;  %s2104_s28 = sshll.u32 %s3306_s14, 3 }
   0xd   : > { %v2601_v2 = vld [vmem:[%s3298_s1 + $0x38] sm:$0xff]   ;;  %2335 = vmatprep.subr.bf16.mxu1 %v2600_v1  ;;  %v2605_v6 = vld [vmem:[%s3298_s1 + $0x30] sm:$0xff]   ;;  %v2609_v10 = vld [vmem:[%s3298_s1 + $0x28] sm:$0xff]   ;;  %s3025_s26 = scalar_lea.vmem %s3297_s0, %s2222_s16  ;;  %s3237_s30 = scalar_lea.vmem %s3304_s7, %s2104_s28 }
   0xe   : > { %v2602_v3 = vld [vmem:[%s3298_s1 + $0xb8] sm:$0xff]   ;;  %2224 = vmatpush3.bf16.msra.mxu0 %v2601_v2  ;;  %v2606_v7 = vld [vmem:[%s3298_s1 + $0xb0] sm:$0xff]   ;;  %v2610_v11 = vld [vmem:[%s3298_s1 + $0xa8] sm:$0xff]  }
   0xf   : > { %2336 = vmatpush3.bf16.msra.mxu1 %v2602_v3  ;;  %2225 = vmatprep.subr.bf16.mxu0 %v2603_v4  ;;  %v2611_v12 = vld [vmem:[%s3298_s1 + $0x60] sm:$0xff]   ;;  %v2615_v16 = vld [vmem:[%s3298_s1 + $0x58] sm:$0xff]   ;;  %v2619_v20 = vld [vmem:[%s3298_s1 + $0x50] sm:$0xff]  }
  0x10   : > { %2337 = vmatprep.subr.bf16.mxu1 %v2604_v5  ;;  %v2612_v13 = vld [vmem:[%s3298_s1 + $0xe0] sm:$0xff]   ;;  %v2616_v17 = vld [vmem:[%s3298_s1 + $0xd8] sm:$0xff]   ;;  %v2620_v21 = vld [vmem:[%s3298_s1 + $0xd0] sm:$0xff]  }
  0x11   : > { %v2613_v14 = vld [vmem:[%s3298_s1 + $0x20] sm:$0xff]   ;;  %v2617_v18 = vld [vmem:[%s3298_s1 + $0x18] sm:$0xff]   ;;  %v2621_v22 = vld [vmem:[%s3298_s1 + $0x10] sm:$0xff]  }
  0x12   : > { %2226 = vmatpush3.bf16.msra.mxu0 %v2605_v6  ;;  %v2614_v15 = vld [vmem:[%s3298_s1 + $0xa0] sm:$0xff]   ;;  %v2618_v19 = vld [vmem:[%s3298_s1 + $0x98] sm:$0xff]   ;;  %v2622_v23 = vld [vmem:[%s3298_s1 + $0x90] sm:$0xff]  }
  0x13   : > { %2338 = vmatpush3.bf16.msra.mxu1 %v2606_v7  ;;  %2227 = vmatprep.subr.bf16.mxu0 %v2607_v8  ;;  %v2623_v24 = vld [vmem:[%s3298_s1 + $0x48] sm:$0xff]   ;;  %v2627_v28 = vld [vmem:[%s3298_s1 + $0x40] sm:$0xff]   ;;  %v2727_v58 = vld [vmem:[%s3300_s3 + $0x38] sm:$0xff]  }
  0x14   : > { %2339 = vmatprep.subr.bf16.mxu1 %v2608_v9  ;;  %v2624_v25 = vld [vmem:[%s3298_s1 + $0xc8] sm:$0xff]   ;;  %v2628_v29 = vld [vmem:[%s3298_s1 + $0xc0] sm:$0xff]   ;;  %v2728_v59 = vld [vmem:[%s3300_s3 + $0x30] sm:$0xff]  }
  0x15   : > { %v2625_v26 = vld [vmem:[%s3298_s1 + $0x8] sm:$0xff]   ;;  %v2629_v30 = vld [vmem:[%s3298_s1] sm:$0xff]  }
  0x16   : > { %2228 = vmatpush3.bf16.msra.mxu0 %v2609_v10  ;;  %v2626_v27 = vld [vmem:[%s3298_s1 + $0x88] sm:$0xff]   ;;  %v2630_v31 = vld [vmem:[%s3298_s1 + $0x80] sm:$0xff]  }
  0x17   : > { %2340 = vmatpush3.bf16.msra.mxu1 %v2610_v11  ;;  %2229 = vmatprep.subr.bf16.mxu0 %v2611_v12  ;;  %v2631_v32 = vld [vmem:[%s3025_s26] ss:$16 sps:$4 sm:$0xff]   ;;  %v2633_v33 = vld [vmem:[%s3025_s26 + $0x4] ss:$16 sps:$4 sm:$0xff]   ;;  %v2634_v34 = vld [vmem:[%s3025_s26 + $0x8] ss:$16 sps:$4 sm:$0xff]  }
  0x18   : > { %2341 = vmatprep.subr.bf16.mxu1 %v2612_v13  ;;  %v2636_v35 = vld [vmem:[%s3025_s26 + $0xc] ss:$16 sps:$4 sm:$0xff]   ;;  %965 = vmatprep.mubr.bf16.mxu0 %v2633_v33  ;;  %v2637_v36 = vld [vmem:[%s3025_s26 + $0x24] ss:$16 sps:$4 sm:$0xff]   ;;  %v2641_v38 = vld [vmem:[%s3025_s26 + $0x20] ss:$16 sps:$4 sm:$0xff]  }
  0x19   : > { %1126 = vmatprep.mubr.bf16.mxu1 %v2636_v35  ;;  %v2639_v37 = vld [vmem:[%s3025_s26 + $0x2c] ss:$16 sps:$4 sm:$0xff]   ;;  %v2642_v39 = vld [vmem:[%s3025_s26 + $0x28] ss:$16 sps:$4 sm:$0xff]   ;;  %v2643_v40 = vld [vmem:[%s3025_s26 + $0x44] ss:$16 sps:$4 sm:$0xff]  }
  0x1a   : > { %2230 = vmatpush3.bf16.msra.mxu0 %v2613_v14  ;;  %v2645_v41 = vld [vmem:[%s3025_s26 + $0x4c] ss:$16 sps:$4 sm:$0xff]   ;;  %v2647_v42 = vld [vmem:[%s3025_s26 + $0x40] ss:$16 sps:$4 sm:$0xff]   ;;  %v2648_v43 = vld [vmem:[%s3025_s26 + $0x48] ss:$16 sps:$4 sm:$0xff]  }
  0x1b   : > { %2342 = vmatpush3.bf16.msra.mxu1 %v2614_v15  ;;  %2231 = vmatprep.subr.bf16.mxu0 %v2615_v16  ;;  %v2649_v44 = vld [vmem:[%s3025_s26 + $0x64] ss:$16 sps:$4 sm:$0xff]   ;;  %v2651_v45 = vld [vmem:[%s3025_s26 + $0x6c] ss:$16 sps:$4 sm:$0xff]   ;;  %v2653_v46 = vld [vmem:[%s3025_s26 + $0x60] ss:$16 sps:$4 sm:$0xff]  }
  0x1c   : > { %2343 = vmatprep.subr.bf16.mxu1 %v2616_v17  ;;  %v2654_v47 = vld [vmem:[%s3025_s26 + $0x68] ss:$16 sps:$4 sm:$0xff]   ;;  %v2655_v48 = vld [vmem:[%s3025_s26 + $0x84] ss:$16 sps:$4 sm:$0xff]   ;;  %v2657_v49 = vld [vmem:[%s3025_s26 + $0x8c] ss:$16 sps:$4 sm:$0xff]  }
  0x1d   : > { %v2659_v50 = vld [vmem:[%s3025_s26 + $0x80] ss:$16 sps:$4 sm:$0xff]   ;;  %v2660_v51 = vld [vmem:[%s3025_s26 + $0x88] ss:$16 sps:$4 sm:$0xff]   ;;  %v2661_v52 = vld [vmem:[%s3025_s26 + $0xa4] ss:$16 sps:$4 sm:$0xff]  }
  0x1e   : > { %2232 = vmatpush3.bf16.msra.mxu0 %v2617_v18  ;;  %v2663_v53 = vld [vmem:[%s3025_s26 + $0xac] ss:$16 sps:$4 sm:$0xff]   ;;  %v2665_v54 = vld [vmem:[%s3025_s26 + $0xa0] ss:$16 sps:$4 sm:$0xff]   ;;  %v2666_v55 = vld [vmem:[%s3025_s26 + $0xa8] ss:$16 sps:$4 sm:$0xff]  }
  0x1f   : > { %2344 = vmatpush3.bf16.msra.mxu1 %v2618_v19  ;;  %2233 = vmatprep.subr.bf16.mxu0 %v2619_v20  ;;  %v2667_v56 = vld [vmem:[%s3025_s26 + $0xc4] ss:$16 sps:$4 sm:$0xff]   ;;  %v2669_v57 = vld [vmem:[%s3025_s26 + $0xcc] ss:$16 sps:$4 sm:$0xff]   ;;  %v2671_v60 = vld [vmem:[%s3025_s26 + $0xc0] ss:$16 sps:$4 sm:$0xff]  }
  0x20   : > { %2345 = vmatprep.subr.bf16.mxu1 %v2620_v21  ;;  %v2729_v61 = vld [vmem:[%s3300_s3 + $0x28] sm:$0xff]   ;;  %v2673_v63 = vld [vmem:[%s3025_s26 + $0xe4] ss:$16 sps:$4 sm:$0xff]   ;;  %v2677_v1 = vld [vmem:[%s3025_s26 + $0xe0] ss:$16 sps:$4 sm:$0xff]  }
  0x21   : > { %v2672_v62 = vld [vmem:[%s3025_s26 + $0xc8] ss:$16 sps:$4 sm:$0xff]   ;;  %v2675_v0 = vld [vmem:[%s3025_s26 + $0xec] ss:$16 sps:$4 sm:$0xff]   ;;  %v2679_v3 = vld [vmem:[%s3025_s26 + $0x104] ss:$16 sps:$4 sm:$0xff]  }
  0x22   : > { %2234 = vmatpush3.bf16.msra.mxu0 %v2621_v22  ;;  %v2678_v2 = vld [vmem:[%s3025_s26 + $0xe8] ss:$16 sps:$4 sm:$0xff]   ;;  %v2681_v4 = vld [vmem:[%s3025_s26 + $0x10c] ss:$16 sps:$4 sm:$0xff]   ;;  %v2683_v5 = vld [vmem:[%s3025_s26 + $0x100] ss:$16 sps:$4 sm:$0xff]  }
  0x23   : > { %2346 = vmatpush3.bf16.msra.mxu1 %v2622_v23  ;;  %2235 = vmatprep.subr.bf16.mxu0 %v2623_v24  ;;  %v2684_v6 = vld [vmem:[%s3025_s26 + $0x108] ss:$16 sps:$4 sm:$0xff]   ;;  %v2685_v7 = vld [vmem:[%s3025_s26 + $0x124] ss:$16 sps:$4 sm:$0xff]   ;;  %v2687_v8 = vld [vmem:[%s3025_s26 + $0x12c] ss:$16 sps:$4 sm:$0xff]  }
  0x24   : > { %2347 = vmatprep.subr.bf16.mxu1 %v2624_v25  ;;  %v2730_v9 = vld [vmem:[%s3300_s3 + $0x20] sm:$0xff]   ;;  %v2690_v11 = vld [vmem:[%s3025_s26 + $0x128] ss:$16 sps:$4 sm:$0xff]   ;;  %v2693_v13 = vld [vmem:[%s3025_s26 + $0x14c] ss:$16 sps:$4 sm:$0xff]  }
  0x25   : > { %v2689_v10 = vld [vmem:[%s3025_s26 + $0x120] ss:$16 sps:$4 sm:$0xff]   ;;  %v2691_v12 = vld [vmem:[%s3025_s26 + $0x144] ss:$16 sps:$4 sm:$0xff]   ;;  %v2731_v14 = vld [vmem:[%s3300_s3 + $0x18] sm:$0xff]  }
  0x26   : > { %2236 = vmatpush3.bf16.msra.mxu0 %v2625_v26  ;;  %v2695_v15 = vld [vmem:[%s3025_s26 + $0x140] ss:$16 sps:$4 sm:$0xff]   ;;  %v2696_v17 = vld [vmem:[%s3025_s26 + $0x148] ss:$16 sps:$4 sm:$0xff]   ;;  %v2697_v18 = vld [vmem:[%s3025_s26 + $0x164] ss:$16 sps:$4 sm:$0xff]  }
  0x27   : > { %2348 = vmatpush3.bf16.msra.mxu1 %v2626_v27  ;;  %2237 = vmatprep.subr.bf16.mxu0 %v2627_v28  ;;  %v2732_v16 = vld [vmem:[%s3300_s3 + $0x10] sm:$0xff]   ;;  %v2699_v19 = vld [vmem:[%s3025_s26 + $0x16c] ss:$16 sps:$4 sm:$0xff]   ;;  %v2734_v22 = vld [vmem:[%s3300_s3] sm:$0xff]  }
  0x28   : > { %2349 = vmatprep.subr.bf16.mxu1 %v2628_v29  ;;  %v2733_v20 = vld [vmem:[%s3300_s3 + $0x8] sm:$0xff]   ;;  %v2701_v21 = vld [vmem:[%s3025_s26 + $0x160] ss:$16 sps:$4 sm:$0xff]   ;;  %v2703_v24 = vld [vmem:[%s3025_s26 + $0x184] ss:$16 sps:$4 sm:$0xff]  }
  0x29   : > { %v2702_v23 = vld [vmem:[%s3025_s26 + $0x168] ss:$16 sps:$4 sm:$0xff]   ;;  %v2705_v25 = vld [vmem:[%s3025_s26 + $0x18c] ss:$16 sps:$4 sm:$0xff]   ;;  %v2707_v26 = vld [vmem:[%s3025_s26 + $0x180] ss:$16 sps:$4 sm:$0xff]  }
  0x2a   : > { %2238 = vmatpush3.bf16.msra.mxu0 %v2629_v30  ;;  %v2708_v27 = vld [vmem:[%s3025_s26 + $0x188] ss:$16 sps:$4 sm:$0xff]   ;;  %v2709_v28 = vld [vmem:[%s3025_s26 + $0x1a4] ss:$16 sps:$4 sm:$0xff]   ;;  %v2711_v29 = vld [vmem:[%s3025_s26 + $0x1ac] ss:$16 sps:$4 sm:$0xff]  }
  0x2b   : > { %2350 = vmatpush3.bf16.msra.mxu1 %v2630_v31  ;;  %2495 = vmatprep.subr.bf16.mxu0 %v2727_v58  ;;  %v2713_v30 = vld [vmem:[%s3025_s26 + $0x1a0] ss:$16 sps:$4 sm:$0xff]   ;;  %v2714_v31 = vld [vmem:[%s3025_s26 + $0x1a8] ss:$16 sps:$4 sm:$0xff]   ;;  %v2717_v33 = vld [vmem:[%s3025_s26 + $0x1cc] ss:$16 sps:$4 sm:$0xff]  }
  0x2c   : > { %v2720_v35 = vld [vmem:[%s3025_s26 + $0x1c8] ss:$16 sps:$4 sm:$0xff]  }
  0x2d   : > { %966 = vmatmul.mubr.bf16.vlgmr.msra.gmra.mxu0 %v2631_v32  ;;  %v2715_v32 = vld [vmem:[%s3025_s26 + $0x1c4] ss:$16 sps:$4 sm:$0xff]  }
  0x2e   : > { %1127 = vmatmul.mubr.bf16.vlgmr.msra.gmra.mxu1 %v2634_v34  ;;  %973 = vmatprep.mubr.bf16.mxu0 %v2637_v36  ;;  %v2719_v34 = vld [vmem:[%s3025_s26 + $0x1c0] ss:$16 sps:$4 sm:$0xff]   ;;  %v2721_v36 = vld [vmem:[%s3025_s26 + $0x1e4] ss:$16 sps:$4 sm:$0xff]  }
  0x2f   : > { %1134 = vmatprep.mubr.bf16.mxu1 %v2639_v37  ;;  %2496 = vmatpush3.bf16.msra.mxu0 %v2727_v58  ;;  %v2723_v37 = vld [vmem:[%s3025_s26 + $0x1ec] ss:$16 sps:$4 sm:$0xff]  }
  0x30   : > { %2497 = vmatprep.subr.bf16.mxu0 %v2728_v59  ;;  %v2735_v58 = vld [vmem:[%s3302_s5 + $0x38] sm:$0xff]  }
  0x31   : > { %2543 = vmatprep.subr.bf16.mxu1 %v2735_v58 }
  0x32   : > { %2544 = vmatpush3.bf16.msra.mxu1 %v2735_v58 }
  0x33   : > { %2498 = vmatpush3.bf16.msra.mxu0 %v2728_v59  ;;  %v2736_v59 = vld [vmem:[%s3302_s5 + $0x30] sm:$0xff]  }
  0x34   : > { %2499 = vmatprep.subr.bf16.mxu0 %v2729_v61  ;;  %2545 = vmatprep.subr.bf16.mxu1 %v2736_v59 }
  0x35   : > { %974 = vmatmul.mubr.bf16.gmra.mxu0 %v2641_v38  ;;  %v2725_v38 = vld [vmem:[%s3025_s26 + $0x1e0] ss:$16 sps:$4 sm:$0xff]  }
  0x36   : > { %1135 = vmatmul.mubr.bf16.gmra.mxu1 %v2642_v39  ;;  %981 = vmatprep.mubr.bf16.mxu0 %v2643_v40  ;;  %v2726_v39 = vld [vmem:[%s3025_s26 + $0x1e8] ss:$16 sps:$4 sm:$0xff]  }
  0x37   : > { %1142 = vmatprep.mubr.bf16.mxu1 %v2645_v41  ;;  %2500 = vmatpush3.bf16.msra.mxu0 %v2729_v61 }
  0x38   : > { %2501 = vmatprep.subr.bf16.mxu0 %v2730_v9  ;;  %2546 = vmatpush3.bf16.msra.mxu1 %v2736_v59 }
  0x3b   : > { %2502 = vmatpush3.bf16.msra.mxu0 %v2730_v9 }
  0x3c   : > { %2503 = vmatprep.subr.bf16.mxu0 %v2731_v14 }
  0x3d   : > { %982 = vmatmul.mubr.bf16.gmra.mxu0 %v2647_v42  ;;  %v3124_v42 = vld [vmem:[%s3299_s2] ss:$0 sm:$0xff] }
  0x3e   : > { %1143 = vmatmul.mubr.bf16.gmra.mxu1 %v2648_v43  ;;  %989 = vmatprep.mubr.bf16.mxu0 %v2649_v44 }
  0x3f   : > { %1150 = vmatprep.mubr.bf16.mxu1 %v2651_v45  ;;  %2504 = vmatpush3.bf16.msra.mxu0 %v2731_v14 }
  0x40   : > { %2505 = vmatprep.subr.bf16.mxu0 %v2732_v16 }
  0x43   : > { %2506 = vmatpush3.bf16.msra.mxu0 %v2732_v16  ;;  %v2738_v16 = vld [vmem:[%s3302_s5 + $0x20] sm:$0xff]  }
  0x44   : > { %2507 = vmatprep.subr.bf16.mxu0 %v2733_v20 }
  0x45   : > { %990 = vmatmul.mubr.bf16.gmra.mxu0 %v2653_v46 }
  0x46   : > { %1151 = vmatmul.mubr.bf16.gmra.mxu1 %v2654_v47  ;;  %997 = vmatprep.mubr.bf16.mxu0 %v2655_v48 }
  0x47   : > { %1158 = vmatprep.mubr.bf16.mxu1 %v2657_v49  ;;  %2508 = vmatpush3.bf16.msra.mxu0 %v2733_v20 }
  0x48   : > { %2509 = vmatprep.subr.bf16.mxu0 %v2734_v22 }
  0x4b   : > { %2510 = vmatpush3.bf16.msra.mxu0 %v2734_v22 }
  0x4d   : > { %998 = vmatmul.mubr.bf16.gmra.mxu0 %v2659_v50 }
  0x4e   : > { %1159 = vmatmul.mubr.bf16.gmra.mxu1 %v2660_v51  ;;  %1005 = vmatprep.mubr.bf16.mxu0 %v2661_v52 }
  0x4f   : > { %1166 = vmatprep.mubr.bf16.mxu1 %v2663_v53 }
  0x55   : > { %1006 = vmatmul.mubr.bf16.gmra.mxu0 %v2665_v54 }
  0x56   : > { %1167 = vmatmul.mubr.bf16.gmra.mxu1 %v2666_v55  ;;  %1013 = vmatprep.mubr.bf16.mxu0 %v2667_v56 }
  0x57   : > { %1174 = vmatprep.mubr.bf16.mxu1 %v2669_v57 }
  0x5d   : > { %1014 = vmatmul.mubr.bf16.gmra.mxu0 %v2671_v60 }
  0x5e   : > { %1175 = vmatmul.mubr.bf16.gmra.mxu1 %v2672_v62  ;;  %1021 = vmatprep.mubr.bf16.mxu0 %v2673_v63 }
  0x5f   : > { %1182 = vmatprep.mubr.bf16.mxu1 %v2675_v0 }
  0x65   : > { %1022 = vmatmul.mubr.bf16.gmra.mxu0 %v2677_v1 }
  0x66   : > { %1183 = vmatmul.mubr.bf16.gmra.mxu1 %v2678_v2  ;;  %1029 = vmatprep.mubr.bf16.mxu0 %v2679_v3 }
  0x67   : > { %1190 = vmatprep.mubr.bf16.mxu1 %v2681_v4 }
  0x6d   : > { %1030 = vmatmul.mubr.bf16.gmra.mxu0 %v2683_v5  ;;  %v2737_v5 = vld [vmem:[%s3302_s5 + $0x28] sm:$0xff]  }
  0x6e   : > { %1191 = vmatmul.mubr.bf16.gmra.mxu1 %v2684_v6  ;;  %1037 = vmatprep.mubr.bf16.mxu0 %v2685_v7 }
  0x6f   : > { %1198 = vmatprep.mubr.bf16.mxu1 %v2687_v8  ;;  %2547 = vmatprep.subr.bf16.mxu1 %v2737_v5 }
  0x70   : > { %2548 = vmatpush3.bf16.msra.mxu1 %v2737_v5 }
  0x71   : > { %2549 = vmatprep.subr.bf16.mxu1 %v2738_v16 }
  0x74   : > { %2550 = vmatpush3.bf16.msra.mxu1 %v2738_v16 }
  0x75   : > { %1038 = vmatmul.mubr.bf16.gmra.mxu0 %v2689_v10 }
  0x76   : > { %1199 = vmatmul.mubr.bf16.gmra.mxu1 %v2690_v11  ;;  %1045 = vmatprep.mubr.bf16.mxu0 %v2691_v12 }
  0x77   : > { %1206 = vmatprep.mubr.bf16.mxu1 %v2693_v13 }
  0x7d   : > { %1046 = vmatmul.mubr.bf16.gmra.mxu0 %v2695_v15 }
  0x7e   : > { %1207 = vmatmul.mubr.bf16.gmra.mxu1 %v2696_v17  ;;  %1053 = vmatprep.mubr.bf16.mxu0 %v2697_v18 }
  0x7f   : > { %1214 = vmatprep.mubr.bf16.mxu1 %v2699_v19 }
  0x85   : > { %1054 = vmatmul.mubr.bf16.gmra.mxu0 %v2701_v21 }
  0x86   : > { %1215 = vmatmul.mubr.bf16.gmra.mxu1 %v2702_v23  ;;  %1061 = vmatprep.mubr.bf16.mxu0 %v2703_v24 }
  0x87   : > { %1222 = vmatprep.mubr.bf16.mxu1 %v2705_v25 }
  0x8d   : > { %1062 = vmatmul.mubr.bf16.gmra.mxu0 %v2707_v26  ;;  %v2739_v26 = vld [vmem:[%s3302_s5 + $0x18] sm:$0xff]  }
  0x8e   : > { %1223 = vmatmul.mubr.bf16.gmra.mxu1 %v2708_v27  ;;  %1069 = vmatprep.mubr.bf16.mxu0 %v2709_v28 }
  0x8f   : > { %1230 = vmatprep.mubr.bf16.mxu1 %v2711_v29  ;;  %2551 = vmatprep.subr.bf16.mxu1 %v2739_v26 }
  0x90   : > { %2552 = vmatpush3.bf16.msra.mxu1 %v2739_v26 }
  0x95   : > { %1070 = vmatmul.mubr.bf16.gmra.mxu0 %v2713_v30 }
  0x96   : > { %1231 = vmatmul.mubr.bf16.gmra.mxu1 %v2714_v31  ;;  %1077 = vmatprep.mubr.bf16.mxu0 %v2715_v32 }
  0x97   : > { %1238 = vmatprep.mubr.bf16.mxu1 %v2717_v33 }
  0x9d   : > { %1078 = vmatmul.mubr.bf16.gmra.mxu0 %v2719_v34 }
  0x9e   : > { %1239 = vmatmul.mubr.bf16.gmra.mxu1 %v2720_v35  ;;  %1085 = vmatprep.mubr.bf16.mxu0 %v2721_v36 }
  0x9f   : > { %1246 = vmatprep.mubr.bf16.mxu1 %v2723_v37 }
  0xa5   : > { %1086 = vmatmul.mubr.bf16.gmra.mxu0 %v2725_v38 }
  0xa6   : > { %1247 = vmatmul.mubr.bf16.gmra.mxu1 %v2726_v39 }
  0xed   : > { %v2239_v40 = vpop.f32.mrf.mxu0 }
  0xee   : > { %v2351_v41 = vpop.f32.mrf.mxu1 }
  0xef   : > { %v2240_v43 = vpop.f32.mrf.mxu0 }
  0xf0   : > { %v2241_v44 = vadd.f32 %v2240_v43, %v2239_v40  ;;  %v2352_v45 = vpop.f32.mrf.mxu1 }
  0xf1   : > { %v2242_v46 = vpop.f32.mrf.mxu0  ;;  %v2353_v50 = vadd.f32 %v2352_v45, %v2351_v41 }
  0xf2   : > { %v968_v47 = vadd.f32 %v2241_v44, %v3124_v42  ;;  %v2354_v48 = vpop.f32.mrf.mxu1 }
  0xf3   : > { %v2243_v49 = vpop.f32.mrf.mxu0 }
  0xf4   : > { %v2244_v51 = vadd.f32 %v2243_v49, %v2242_v46  ;;  %v2355_v52 = vpop.f32.mrf.mxu1  ;;  %v1129_v54 = vadd.f32 %v2353_v50, %v968_v47 }
  0xf5   : > { %v2245_v53 = vpop.f32.mrf.mxu0  ;;  %v2356_v56 = vadd.f32 %v2355_v52, %v2354_v48 }
  0xf6   : > { %v971_v55 = vadd.f32 %v2244_v51, %v3124_v42  ;;  %v2357_v57 = vpop.f32.mrf.mxu1  ;;  %v1255_v1 = vmax.f32 %v1129_v54, 0.0 }
  0xf7   : > { %v2246_v60 = vpop.f32.mrf.mxu0 }
  0xf8   : > { %v1132_v61 = vadd.f32 %v2356_v56, %v971_v55  ;;  %v2247_v62 = vadd.f32 %v2246_v60, %v2245_v53  ;;  %v2358_v63 = vpop.f32.mrf.mxu1 }
  0xf9   : > { %v2248_v0 = vpop.f32.mrf.mxu0  ;;  %v2359_v7 = vadd.f32 %v2358_v63, %v2357_v57 }
  0xfa   : > { %v1256_v2 = vmax.f32 %v1132_v61, 0.0  ;;  %v976_v3 = vadd.f32 %v2247_v62, %v3124_v42  ;;  %v2360_v4 = vpop.f32.mrf.mxu1 }
  0xfb   : > { %v2249_v6 = vpop.f32.mrf.mxu0 }
  0xfc   : > { %v2250_v8 = vadd.f32 %v2249_v6, %v2248_v0  ;;  %v2361_v9 = vpop.f32.mrf.mxu1  ;;  %v1287_v10 = vpack.c.bf16 %v1256_v2, %v1255_v1  ;;  %v1137_v12 = vadd.f32 %v2359_v7, %v976_v3 }
  0xfd   : > { %v2251_v11 = vpop.f32.mrf.mxu0  ;;  %v2362_v14 = vadd.f32 %v2361_v9, %v2360_v4 }
  0xfe   : > { %v979_v13 = vadd.f32 %v2250_v8, %v3124_v42  ;;  %v2363_v15 = vpop.f32.mrf.mxu1  ;;  %2511 = vmatprep.mubr.bf16.mxu0 %v1287_v10  ;;  %v1257_v22 = vmax.f32 %v1137_v12, 0.0 }
  0xff   : > { %v2252_v17 = vpop.f32.mrf.mxu0 }
 0x100   : > { %v1140_v18 = vadd.f32 %v2362_v14, %v979_v13  ;;  %v2253_v19 = vadd.f32 %v2252_v17, %v2251_v11  ;;  %v2364_v20 = vpop.f32.mrf.mxu1 }
 0x101   : > { %v2254_v21 = vpop.f32.mrf.mxu0  ;;  %v2365_v29 = vadd.f32 %v2364_v20, %v2363_v15 }
 0x102   : > { %v1258_v23 = vmax.f32 %v1140_v18, 0.0  ;;  %v984_v24 = vadd.f32 %v2253_v19, %v3124_v42  ;;  %v2366_v25 = vpop.f32.mrf.mxu1 }
 0x103   : > { %v2255_v27 = vpop.f32.mrf.mxu0 }
 0x104   : > { %v1288_v28 = vpack.c.bf16 %v1258_v23, %v1257_v22  ;;  %v2256_v30 = vadd.f32 %v2255_v27, %v2254_v21  ;;  %v2367_v31 = vpop.f32.mrf.mxu1  ;;  %v1145_v33 = vadd.f32 %v2365_v29, %v984_v24 }
 0x105   : > { %v2257_v32 = vpop.f32.mrf.mxu0  ;;  %v2368_v35 = vadd.f32 %v2367_v31, %v2366_v25 }
 0x106   : > { %v987_v34 = vadd.f32 %v2256_v30, %v3124_v42  ;;  %v2369_v36 = vpop.f32.mrf.mxu1  ;;  %2512 = vmatmul.mubr.bf16.vlgmr.msra.gmra.mxu0 %v1288_v28  ;;  %v1259_v43 = vmax.f32 %v1145_v33, 0.0 }
 0x107   : > { %v2258_v37 = vpop.f32.mrf.mxu0 }
 0x108   : > { %v1148_v38 = vadd.f32 %v2368_v35, %v987_v34  ;;  %v2259_v39 = vadd.f32 %v2258_v37, %v2257_v32  ;;  %v2370_v40 = vpop.f32.mrf.mxu1 }
 0x109   : > { %v2260_v41 = vpop.f32.mrf.mxu0  ;;  %v2371_v48 = vadd.f32 %v2370_v40, %v2369_v36 }
 0x10a   : > { %v1260_v44 = vmax.f32 %v1148_v38, 0.0  ;;  %v992_v45 = vadd.f32 %v2259_v39, %v3124_v42  ;;  %v2372_v46 = vpop.f32.mrf.mxu1 }
 0x10b   : > { %v2261_v47 = vpop.f32.mrf.mxu0 }
 0x10c   : > { %v2262_v49 = vadd.f32 %v2261_v47, %v2260_v41  ;;  %v2373_v50 = vpop.f32.mrf.mxu1  ;;  %v1289_v51 = vpack.c.bf16 %v1260_v44, %v1259_v43  ;;  %v1153_v53 = vadd.f32 %v2371_v48, %v992_v45 }
 0x10d   : > { %v2263_v52 = vpop.f32.mrf.mxu0  ;;  %v2374_v55 = vadd.f32 %v2373_v50, %v2372_v46 }
 0x10e   : > { %v995_v54 = vadd.f32 %v2262_v49, %v3124_v42  ;;  %v2375_v56 = vpop.f32.mrf.mxu1  ;;  %2515 = vmatprep.mubr.bf16.mxu0 %v1289_v51  ;;  %v1261_v62 = vmax.f32 %v1153_v53, 0.0 }
 0x10f   : > { %v2264_v57 = vpop.f32.mrf.mxu0 }
 0x110   : > { %v1156_v58 = vadd.f32 %v2374_v55, %v995_v54  ;;  %v2265_v59 = vadd.f32 %v2264_v57, %v2263_v52  ;;  %v2376_v60 = vpop.f32.mrf.mxu1 }
 0x111   : > { %v2266_v61 = vpop.f32.mrf.mxu0  ;;  %v2377_v3 = vadd.f32 %v2376_v60, %v2375_v56 }
 0x112   : > { %v1262_v63 = vmax.f32 %v1156_v58, 0.0  ;;  %v1000_v0 = vadd.f32 %v2265_v59, %v3124_v42  ;;  %v2378_v1 = vpop.f32.mrf.mxu1 }
 0x113   : > { %v2267_v2 = vpop.f32.mrf.mxu0 }
 0x114   : > { %v2268_v4 = vadd.f32 %v2267_v2, %v2266_v61  ;;  %v2379_v5 = vpop.f32.mrf.mxu1  ;;  %v1290_v6 = vpack.c.bf16 %v1262_v63, %v1261_v62  ;;  %v1161_v8 = vadd.f32 %v2377_v3, %v1000_v0 }
 0x115   : > { %v2269_v7 = vpop.f32.mrf.mxu0  ;;  %v2380_v10 = vadd.f32 %v2379_v5, %v2378_v1 }
 0x116   : > { %v1003_v9 = vadd.f32 %v2268_v4, %v3124_v42  ;;  %v2381_v11 = vpop.f32.mrf.mxu1  ;;  %2516 = vmatmul.mubr.bf16.gmra.mxu0 %v1290_v6  ;;  %v1263_v17 = vmax.f32 %v1161_v8, 0.0 }
 0x117   : > { %v2270_v12 = vpop.f32.mrf.mxu0 }
 0x118   : > { %v1164_v13 = vadd.f32 %v2380_v10, %v1003_v9  ;;  %v2271_v14 = vadd.f32 %v2270_v12, %v2269_v7  ;;  %v2382_v15 = vpop.f32.mrf.mxu1 }
 0x119   : > { %v2272_v16 = vpop.f32.mrf.mxu0  ;;  %v2383_v22 = vadd.f32 %v2382_v15, %v2381_v11 }
 0x11a   : > { %v1264_v18 = vmax.f32 %v1164_v13, 0.0  ;;  %v1008_v19 = vadd.f32 %v2271_v14, %v3124_v42  ;;  %v2384_v20 = vpop.f32.mrf.mxu1 }
 0x11b   : > { %v2273_v21 = vpop.f32.mrf.mxu0 }
 0x11c   : > { %v2274_v23 = vadd.f32 %v2273_v21, %v2272_v16  ;;  %v2385_v24 = vpop.f32.mrf.mxu1  ;;  %v1291_v25 = vpack.c.bf16 %v1264_v18, %v1263_v17  ;;  %v1169_v27 = vadd.f32 %v2383_v22, %v1008_v19 }
 0x11d   : > { %v2275_v26 = vpop.f32.mrf.mxu0  ;;  %v2386_v29 = vadd.f32 %v2385_v24, %v2384_v20 }
 0x11e   : > { %v1011_v28 = vadd.f32 %v2274_v23, %v3124_v42  ;;  %v2387_v30 = vpop.f32.mrf.mxu1  ;;  %2519 = vmatprep.mubr.bf16.mxu0 %v1291_v25  ;;  %v1265_v36 = vmax.f32 %v1169_v27, 0.0 }
 0x11f   : > { %v2276_v31 = vpop.f32.mrf.mxu0 }
 0x120   : > { %v1172_v32 = vadd.f32 %v2386_v29, %v1011_v28  ;;  %v2277_v33 = vadd.f32 %v2276_v31, %v2275_v26  ;;  %v2388_v34 = vpop.f32.mrf.mxu1 }
 0x121   : > { %v2278_v35 = vpop.f32.mrf.mxu0  ;;  %v2389_v41 = vadd.f32 %v2388_v34, %v2387_v30 }
 0x122   : > { %v1266_v37 = vmax.f32 %v1172_v32, 0.0  ;;  %v1016_v38 = vadd.f32 %v2277_v33, %v3124_v42  ;;  %v2390_v39 = vpop.f32.mrf.mxu1 }
 0x123   : > { %v2279_v40 = vpop.f32.mrf.mxu0 }
 0x124   : > { %v2280_v43 = vadd.f32 %v2279_v40, %v2278_v35  ;;  %v2391_v44 = vpop.f32.mrf.mxu1  ;;  %v1292_v45 = vpack.c.bf16 %v1266_v37, %v1265_v36  ;;  %v1177_v47 = vadd.f32 %v2389_v41, %v1016_v38 }
 0x125   : > { %v2281_v46 = vpop.f32.mrf.mxu0  ;;  %v2392_v49 = vadd.f32 %v2391_v44, %v2390_v39 }
 0x126   : > { %v1019_v48 = vadd.f32 %v2280_v43, %v3124_v42  ;;  %v2393_v50 = vpop.f32.mrf.mxu1  ;;  %2520 = vmatmul.mubr.bf16.gmra.mxu0 %v1292_v45  ;;  %v1267_v56 = vmax.f32 %v1177_v47, 0.0 }
 0x127   : > { %v2282_v51 = vpop.f32.mrf.mxu0 }
 0x128   : > { %v1180_v52 = vadd.f32 %v2392_v49, %v1019_v48  ;;  %v2283_v53 = vadd.f32 %v2282_v51, %v2281_v46  ;;  %v2394_v54 = vpop.f32.mrf.mxu1 }
 0x129   : > { %v2284_v55 = vpop.f32.mrf.mxu0  ;;  %v2395_v61 = vadd.f32 %v2394_v54, %v2393_v50 }
 0x12a   : > { %v1268_v57 = vmax.f32 %v1180_v52, 0.0  ;;  %v1024_v58 = vadd.f32 %v2283_v53, %v3124_v42  ;;  %v2396_v59 = vpop.f32.mrf.mxu1 }
 0x12b   : > { %v2285_v60 = vpop.f32.mrf.mxu0 }
 0x12c   : > { %v2286_v62 = vadd.f32 %v2285_v60, %v2284_v55  ;;  %v2397_v63 = vpop.f32.mrf.mxu1  ;;  %v1293_v0 = vpack.c.bf16 %v1268_v57, %v1267_v56  ;;  %v1185_v2 = vadd.f32 %v2395_v61, %v1024_v58 }
 0x12d   : > { %v2287_v1 = vpop.f32.mrf.mxu0  ;;  %v2398_v4 = vadd.f32 %v2397_v63, %v2396_v59 }
 0x12e   : > { %v1027_v3 = vadd.f32 %v2286_v62, %v3124_v42  ;;  %v2399_v5 = vpop.f32.mrf.mxu1  ;;  %2523 = vmatprep.mubr.bf16.mxu0 %v1293_v0  ;;  %v1269_v11 = vmax.f32 %v1185_v2, 0.0 }
 0x12f   : > { %v2288_v6 = vpop.f32.mrf.mxu0 }
 0x130   : > { %v1188_v7 = vadd.f32 %v2398_v4, %v1027_v3  ;;  %v2289_v8 = vadd.f32 %v2288_v6, %v2287_v1  ;;  %v2400_v9 = vpop.f32.mrf.mxu1  ;;  %v2740_v1 = vld [vmem:[%s3302_s5 + $0x10] sm:$0xff]  }
 0x131   : > { %v2290_v10 = vpop.f32.mrf.mxu0  ;;  %v2401_v16 = vadd.f32 %v2400_v9, %v2399_v5  ;;  %2553 = vmatprep.subr.bf16.mxu1 %v2740_v1 }
 0x132   : > { %v1270_v12 = vmax.f32 %v1188_v7, 0.0  ;;  %v1032_v13 = vadd.f32 %v2289_v8, %v3124_v42  ;;  %v2402_v14 = vpop.f32.mrf.mxu1  ;;  %2554 = vmatpush3.bf16.msra.mxu1 %v2740_v1 }
 0x133   : > { %v2291_v15 = vpop.f32.mrf.mxu0 }
 0x134   : > { %v2292_v17 = vadd.f32 %v2291_v15, %v2290_v10  ;;  %v2403_v18 = vpop.f32.mrf.mxu1  ;;  %v1294_v19 = vpack.c.bf16 %v1270_v12, %v1269_v11  ;;  %v1193_v21 = vadd.f32 %v2401_v16, %v1032_v13  ;;  %v2741_v11 = vld [vmem:[%s3302_s5 + $0x8] sm:$0xff]  }
 0x135   : > { %v2293_v20 = vpop.f32.mrf.mxu0  ;;  %v2404_v23 = vadd.f32 %v2403_v18, %v2402_v14  ;;  %2555 = vmatprep.subr.bf16.mxu1 %v2741_v11 }
 0x136   : > { %v1035_v22 = vadd.f32 %v2292_v17, %v3124_v42  ;;  %v2405_v24 = vpop.f32.mrf.mxu1  ;;  %2524 = vmatmul.mubr.bf16.gmra.mxu0 %v1294_v19  ;;  %v1271_v30 = vmax.f32 %v1193_v21, 0.0  ;;  %2556 = vmatpush3.bf16.msra.mxu1 %v2741_v11 }
 0x137   : > { %v2294_v25 = vpop.f32.mrf.mxu0 }
 0x138   : > { %v1196_v26 = vadd.f32 %v2404_v23, %v1035_v22  ;;  %v2295_v27 = vadd.f32 %v2294_v25, %v2293_v20  ;;  %v2406_v28 = vpop.f32.mrf.mxu1  ;;  %v2742_v22 = vld [vmem:[%s3302_s5] sm:$0xff]  }
 0x139   : > { %v2296_v29 = vpop.f32.mrf.mxu0  ;;  %v2407_v35 = vadd.f32 %v2406_v28, %v2405_v24  ;;  %2557 = vmatprep.subr.bf16.mxu1 %v2742_v22 }
 0x13a   : > { %v1272_v31 = vmax.f32 %v1196_v26, 0.0  ;;  %v1040_v32 = vadd.f32 %v2295_v27, %v3124_v42  ;;  %v2408_v33 = vpop.f32.mrf.mxu1  ;;  %2558 = vmatpush3.bf16.msra.mxu1 %v2742_v22 }
 0x13b   : > { %v2297_v34 = vpop.f32.mrf.mxu0 }
 0x13c   : > { %v2298_v36 = vadd.f32 %v2297_v34, %v2296_v29  ;;  %v2409_v37 = vpop.f32.mrf.mxu1  ;;  %v1295_v38 = vpack.c.bf16 %v1272_v31, %v1271_v30  ;;  %v1201_v40 = vadd.f32 %v2407_v35, %v1040_v32 }
 0x13d   : > { %v2299_v39 = vpop.f32.mrf.mxu0  ;;  %v2410_v43 = vadd.f32 %v2409_v37, %v2408_v33 }
 0x13e   : > { %v1043_v41 = vadd.f32 %v2298_v36, %v3124_v42  ;;  %v2411_v44 = vpop.f32.mrf.mxu1  ;;  %2527 = vmatprep.mubr.bf16.mxu0 %v1295_v38  ;;  %v1273_v50 = vmax.f32 %v1201_v40, 0.0 }
 0x13f   : > { %v2300_v45 = vpop.f32.mrf.mxu0 }
 0x140   : > { %v1204_v46 = vadd.f32 %v2410_v43, %v1043_v41  ;;  %v2301_v47 = vadd.f32 %v2300_v45, %v2299_v39  ;;  %v2412_v48 = vpop.f32.mrf.mxu1 }
 0x141   : > { %v2302_v49 = vpop.f32.mrf.mxu0  ;;  %v2413_v55 = vadd.f32 %v2412_v48, %v2411_v44 }
 0x142   : > { %v1274_v51 = vmax.f32 %v1204_v46, 0.0  ;;  %v1048_v52 = vadd.f32 %v2301_v47, %v3124_v42  ;;  %v2414_v53 = vpop.f32.mrf.mxu1 }
 0x143   : > { %v2303_v54 = vpop.f32.mrf.mxu0 }
 0x144   : > { %v2304_v56 = vadd.f32 %v2303_v54, %v2302_v49  ;;  %v2415_v57 = vpop.f32.mrf.mxu1  ;;  %v1296_v58 = vpack.c.bf16 %v1274_v51, %v1273_v50  ;;  %v1209_v60 = vadd.f32 %v2413_v55, %v1048_v52 }
 0x145   : > { %v2305_v59 = vpop.f32.mrf.mxu0  ;;  %v2416_v62 = vadd.f32 %v2415_v57, %v2414_v53 }
 0x146   : > { %v1051_v61 = vadd.f32 %v2304_v56, %v3124_v42  ;;  %v2417_v63 = vpop.f32.mrf.mxu1  ;;  %2528 = vmatmul.mubr.bf16.gmra.mxu0 %v1296_v58  ;;  %v1275_v6 = vmax.f32 %v1209_v60, 0.0 }
 0x147   : > { %v2306_v0 = vpop.f32.mrf.mxu0 }
 0x148   : > { %v1212_v2 = vadd.f32 %v2416_v62, %v1051_v61  ;;  %v2307_v3 = vadd.f32 %v2306_v0, %v2305_v59  ;;  %v2418_v4 = vpop.f32.mrf.mxu1 }
 0x149   : > { %v2308_v5 = vpop.f32.mrf.mxu0  ;;  %v2419_v12 = vadd.f32 %v2418_v4, %v2417_v63 }
 0x14a   : > { %v1276_v7 = vmax.f32 %v1212_v2, 0.0  ;;  %v1056_v8 = vadd.f32 %v2307_v3, %v3124_v42  ;;  %v2420_v9 = vpop.f32.mrf.mxu1 }
 0x14b   : > { %v2309_v10 = vpop.f32.mrf.mxu0 }
 0x14c   : > { %v2310_v13 = vadd.f32 %v2309_v10, %v2308_v5  ;;  %v2421_v14 = vpop.f32.mrf.mxu1  ;;  %v1297_v15 = vpack.c.bf16 %v1276_v7, %v1275_v6  ;;  %v1217_v17 = vadd.f32 %v2419_v12, %v1056_v8 }
 0x14d   : > { %v2311_v16 = vpop.f32.mrf.mxu0  ;;  %v2422_v19 = vadd.f32 %v2421_v14, %v2420_v9 }
 0x14e   : > { %v1059_v18 = vadd.f32 %v2310_v13, %v3124_v42  ;;  %v2423_v20 = vpop.f32.mrf.mxu1  ;;  %2531 = vmatprep.mubr.bf16.mxu0 %v1297_v15  ;;  %v1277_v27 = vmax.f32 %v1217_v17, 0.0 }
 0x14f   : > { %v2312_v21 = vpop.f32.mrf.mxu0 }
 0x150   : > { %v1220_v23 = vadd.f32 %v2422_v19, %v1059_v18  ;;  %v2313_v24 = vadd.f32 %v2312_v21, %v2311_v16  ;;  %v2424_v25 = vpop.f32.mrf.mxu1 }
 0x151   : > { %v2314_v26 = vpop.f32.mrf.mxu0  ;;  %v2425_v32 = vadd.f32 %v2424_v25, %v2423_v20 }
 0x152   : > { %v1278_v28 = vmax.f32 %v1220_v23, 0.0  ;;  %v1064_v29 = vadd.f32 %v2313_v24, %v3124_v42  ;;  %v2426_v30 = vpop.f32.mrf.mxu1 }
 0x153   : > { %v2315_v31 = vpop.f32.mrf.mxu0 }
 0x154   : > { %v2316_v33 = vadd.f32 %v2315_v31, %v2314_v26  ;;  %v2427_v34 = vpop.f32.mrf.mxu1  ;;  %v1298_v35 = vpack.c.bf16 %v1278_v28, %v1277_v27  ;;  %v1225_v37 = vadd.f32 %v2425_v32, %v1064_v29 }
 0x155   : > { %v2317_v36 = vpop.f32.mrf.mxu0  ;;  %v2428_v39 = vadd.f32 %v2427_v34, %v2426_v30 }
 0x156   : > { %v1067_v38 = vadd.f32 %v2316_v33, %v3124_v42  ;;  %v2429_v40 = vpop.f32.mrf.mxu1  ;;  %2532 = vmatmul.mubr.bf16.gmra.mxu0 %v1298_v35  ;;  %v1279_v47 = vmax.f32 %v1225_v37, 0.0 }
 0x157   : > { %v2318_v41 = vpop.f32.mrf.mxu0 }
 0x158   : > { %v1228_v43 = vadd.f32 %v2428_v39, %v1067_v38  ;;  %v2319_v44 = vadd.f32 %v2318_v41, %v2317_v36  ;;  %v2430_v45 = vpop.f32.mrf.mxu1  ;;  %v3185_v39 = vld [vmem:[%s3301_s4] ss:$0 sm:$0xff] }
 0x159   : > { %v2320_v46 = vpop.f32.mrf.mxu0  ;;  %v2431_v52 = vadd.f32 %v2430_v45, %v2429_v40 }
 0x15a   : > { %v1280_v48 = vmax.f32 %v1228_v43, 0.0  ;;  %v1072_v49 = vadd.f32 %v2319_v44, %v3124_v42  ;;  %v2432_v50 = vpop.f32.mrf.mxu1 }
 0x15b   : > { %v2321_v51 = vpop.f32.mrf.mxu0 }
 0x15c   : > { %v2322_v53 = vadd.f32 %v2321_v51, %v2320_v46  ;;  %v2433_v54 = vpop.f32.mrf.mxu1  ;;  %v1299_v55 = vpack.c.bf16 %v1280_v48, %v1279_v47  ;;  %v1233_v57 = vadd.f32 %v2431_v52, %v1072_v49 }
 0x15d   : > { %v2323_v56 = vpop.f32.mrf.mxu0  ;;  %v2434_v59 = vadd.f32 %v2433_v54, %v2432_v50 }
 0x15e   : > { %v1075_v58 = vadd.f32 %v2322_v53, %v3124_v42  ;;  %v2435_v60 = vpop.f32.mrf.mxu1  ;;  %2535 = vmatprep.mubr.bf16.mxu0 %v1299_v55  ;;  %v1281_v2 = vmax.f32 %v1233_v57, 0.0 }
 0x15f   : > { %v2324_v61 = vpop.f32.mrf.mxu0 }
 0x160   : > { %v1236_v62 = vadd.f32 %v2434_v59, %v1075_v58  ;;  %v2325_v63 = vadd.f32 %v2324_v61, %v2323_v56  ;;  %v2436_v0 = vpop.f32.mrf.mxu1 }
 0x161   : > { %v2326_v1 = vpop.f32.mrf.mxu0  ;;  %v2437_v7 = vadd.f32 %v2436_v0, %v2435_v60 }
 0x162   : > { %v1282_v3 = vmax.f32 %v1236_v62, 0.0  ;;  %v1080_v4 = vadd.f32 %v2325_v63, %v3124_v42  ;;  %v2438_v5 = vpop.f32.mrf.mxu1 }
 0x163   : > { %v2327_v6 = vpop.f32.mrf.mxu0 }
 0x164   : > { %v2328_v8 = vadd.f32 %v2327_v6, %v2326_v1  ;;  %v2439_v9 = vpop.f32.mrf.mxu1  ;;  %v1300_v10 = vpack.c.bf16 %v1282_v3, %v1281_v2  ;;  %v1241_v12 = vadd.f32 %v2437_v7, %v1080_v4 }
 0x165   : > { %v2329_v11 = vpop.f32.mrf.mxu0  ;;  %v2440_v14 = vadd.f32 %v2439_v9, %v2438_v5 }
 0x166   : > { %v1083_v13 = vadd.f32 %v2328_v8, %v3124_v42  ;;  %v2441_v15 = vpop.f32.mrf.mxu1  ;;  %2536 = vmatmul.mubr.bf16.gmra.mxu0 %v1300_v10  ;;  %v1283_v21 = vmax.f32 %v1241_v12, 0.0 }
 0x167   : > { %v2330_v16 = vpop.f32.mrf.mxu0 }
 0x168   : > { %v1244_v17 = vadd.f32 %v2440_v14, %v1083_v13  ;;  %v2331_v18 = vadd.f32 %v2330_v16, %v2329_v11  ;;  %v2442_v19 = vpop.f32.mrf.mxu1 }
 0x169   : > { %v2332_v20 = vpop.f32.mrf.mxu0  ;;  %v2443_v26 = vadd.f32 %v2442_v19, %v2441_v15 }
 0x16a   : > { %v1284_v22 = vmax.f32 %v1244_v17, 0.0  ;;  %v1088_v23 = vadd.f32 %v2331_v18, %v3124_v42  ;;  %v2444_v24 = vpop.f32.mrf.mxu1 }
 0x16b   : > { %v2333_v25 = vpop.f32.mrf.mxu0 }
 0x16c   : > { %v2334_v27 = vadd.f32 %v2333_v25, %v2332_v20  ;;  %v2445_v28 = vpop.f32.mrf.mxu1  ;;  %v1301_v29 = vpack.c.bf16 %v1284_v22, %v1283_v21  ;;  %v1249_v30 = vadd.f32 %v2443_v26, %v1088_v23 }
 0x16d   : > { %v2446_v32 = vadd.f32 %v2445_v28, %v2444_v24 }
 0x16e   : > { %v1091_v31 = vadd.f32 %v2334_v27, %v3124_v42  ;;  %2539 = vmatprep.mubr.bf16.mxu0 %v1301_v29  ;;  %v1285_v34 = vmax.f32 %v1249_v30, 0.0 }
 0x170   : > { %v1252_v33 = vadd.f32 %v2446_v32, %v1091_v31 }
 0x172   : > { %v1286_v35 = vmax.f32 %v1252_v33, 0.0 }
 0x174   : > { %v1302_v36 = vpack.c.bf16 %v1286_v35, %v1285_v34 }
 0x176   : > { %2540 = vmatmul.mubr.bf16.gmra.mxu0 %v1302_v36 }
 0x1c6   : > { %v2513_v37 = vpop.f32.mrf.mxu0 }
 0x1c7   : > { %v1417_v42 = vadd.f32 %v2513_v37, %v3185_v39 }
 0x1c8   : > { %v1408_v38 = vpop.f32.mrf.mxu0 }
 0x1c9   : > { %v1409_v41 = vadd.f32 %v3185_v39, %v1408_v38  ;;  %v1537_v49 = vmax.f32 %v1417_v42, 0.0 }
 0x1ca   : > { %v2514_v40 = vpop.f32.mrf.mxu0 }
 0x1cb   : > { %v1420_v43 = vadd.f32 %v2514_v40, %v3185_v39  ;;  %v1535_v47 = vmax.f32 %v1409_v41, 0.0 }
 0x1cc   : > { %v1411_v44 = vpop.f32.mrf.mxu0 }
 0x1cd   : > { %v1412_v45 = vadd.f32 %v3185_v39, %v1411_v44  ;;  %v1538_v46 = vmax.f32 %v1420_v43, 0.0 }
 0x1cf   : > { %v1536_v48 = vmax.f32 %v1412_v45, 0.0  ;;  %v1568_v51 = vpack.c.bf16 %v1538_v46, %v1537_v49 }
 0x1d1   : > { %v1567_v50 = vpack.c.bf16 %v1536_v48, %v1535_v47 }
 0x1d3   : > { %2559 = vmatprep.mubr.bf16.mxu1 %v1567_v50 }
 0x1d4   : > { %2560 = vmatmul.mubr.bf16.vlgmr.msra.gmra.mxu1 %v1568_v51 }
 0x1d6   : > { %v2517_v52 = vpop.f32.mrf.mxu0 }
 0x1d7   : > { %v1433_v57 = vadd.f32 %v2517_v52, %v3185_v39 }
 0x1d8   : > { %v1424_v53 = vpop.f32.mrf.mxu0 }
 0x1d9   : > { %v1425_v55 = vadd.f32 %v3185_v39, %v1424_v53  ;;  %v1541_v63 = vmax.f32 %v1433_v57, 0.0 }
 0x1da   : > { %v2518_v54 = vpop.f32.mrf.mxu0 }
 0x1db   : > { %v1436_v56 = vadd.f32 %v2518_v54, %v3185_v39  ;;  %v1539_v61 = vmax.f32 %v1425_v55, 0.0 }
 0x1dc   : > { %v1427_v58 = vpop.f32.mrf.mxu0 }
 0x1dd   : > { %v1428_v59 = vadd.f32 %v3185_v39, %v1427_v58  ;;  %v1542_v60 = vmax.f32 %v1436_v56, 0.0 }
 0x1df   : > { %v1540_v62 = vmax.f32 %v1428_v59, 0.0  ;;  %v1570_v1 = vpack.c.bf16 %v1542_v60, %v1541_v63 }
 0x1e1   : > { %v1569_v0 = vpack.c.bf16 %v1540_v62, %v1539_v61 }
 0x1e3   : > { %2563 = vmatprep.mubr.bf16.mxu1 %v1569_v0 }
 0x1e4   : > { %2564 = vmatmul.mubr.bf16.gmra.mxu1 %v1570_v1 }
 0x1e6   : > { %v2521_v2 = vpop.f32.mrf.mxu0 }
 0x1e7   : > { %v1449_v7 = vadd.f32 %v2521_v2, %v3185_v39 }
 0x1e8   : > { %v1440_v3 = vpop.f32.mrf.mxu0 }
 0x1e9   : > { %v1441_v5 = vadd.f32 %v3185_v39, %v1440_v3  ;;  %v1545_v13 = vmax.f32 %v1449_v7, 0.0 }
 0x1ea   : > { %v2522_v4 = vpop.f32.mrf.mxu0 }
 0x1eb   : > { %v1452_v6 = vadd.f32 %v2522_v4, %v3185_v39  ;;  %v1543_v11 = vmax.f32 %v1441_v5, 0.0 }
 0x1ec   : > { %v1443_v8 = vpop.f32.mrf.mxu0 }
 0x1ed   : > { %v1444_v9 = vadd.f32 %v3185_v39, %v1443_v8  ;;  %v1546_v10 = vmax.f32 %v1452_v6, 0.0 }
 0x1ef   : > { %v1544_v12 = vmax.f32 %v1444_v9, 0.0  ;;  %v1572_v15 = vpack.c.bf16 %v1546_v10, %v1545_v13 }
 0x1f1   : > { %v1571_v14 = vpack.c.bf16 %v1544_v12, %v1543_v11 }
 0x1f3   : > { %2567 = vmatprep.mubr.bf16.mxu1 %v1571_v14 }
 0x1f4   : > { %2568 = vmatmul.mubr.bf16.gmra.mxu1 %v1572_v15 }
 0x1f6   : > { %v2525_v16 = vpop.f32.mrf.mxu0 }
 0x1f7   : > { %v1465_v21 = vadd.f32 %v2525_v16, %v3185_v39 }
 0x1f8   : > { %v1456_v17 = vpop.f32.mrf.mxu0 }
 0x1f9   : > { %v1457_v19 = vadd.f32 %v3185_v39, %v1456_v17  ;;  %v1549_v27 = vmax.f32 %v1465_v21, 0.0 }
 0x1fa   : > { %v2526_v18 = vpop.f32.mrf.mxu0 }
 0x1fb   : > { %v1468_v20 = vadd.f32 %v2526_v18, %v3185_v39  ;;  %v1547_v25 = vmax.f32 %v1457_v19, 0.0 }
 0x1fc   : > { %v1459_v22 = vpop.f32.mrf.mxu0 }
 0x1fd   : > { %v1460_v23 = vadd.f32 %v3185_v39, %v1459_v22  ;;  %v1550_v24 = vmax.f32 %v1468_v20, 0.0 }
 0x1ff   : > { %v1548_v26 = vmax.f32 %v1460_v23, 0.0  ;;  %v1574_v29 = vpack.c.bf16 %v1550_v24, %v1549_v27  ;;  %v3222_v23 = vld [vmem:[%s3303_s6] ss:$0 sm:$0xff] }
 0x201   : > { %v1573_v28 = vpack.c.bf16 %v1548_v26, %v1547_v25 }
 0x203   : > { %2571 = vmatprep.mubr.bf16.mxu1 %v1573_v28 }
 0x204   : > { %2572 = vmatmul.mubr.bf16.gmra.mxu1 %v1574_v29 }
 0x206   : > { %v2529_v30 = vpop.f32.mrf.mxu0 }
 0x207   : > { %v1481_v35 = vadd.f32 %v2529_v30, %v3185_v39 }
 0x208   : > { %v1472_v31 = vpop.f32.mrf.mxu0 }
 0x209   : > { %v1473_v33 = vadd.f32 %v3185_v39, %v1472_v31  ;;  %v1553_v43 = vmax.f32 %v1481_v35, 0.0 }
 0x20a   : > { %v2530_v32 = vpop.f32.mrf.mxu0 }
 0x20b   : > { %v1484_v34 = vadd.f32 %v2530_v32, %v3185_v39  ;;  %v1551_v40 = vmax.f32 %v1473_v33, 0.0 }
 0x20c   : > { %v1475_v36 = vpop.f32.mrf.mxu0 }
 0x20d   : > { %v1476_v37 = vadd.f32 %v3185_v39, %v1475_v36  ;;  %v1554_v38 = vmax.f32 %v1484_v34, 0.0 }
 0x20f   : > { %v1552_v41 = vmax.f32 %v1476_v37, 0.0  ;;  %v1576_v44 = vpack.c.bf16 %v1554_v38, %v1553_v43 }
 0x211   : > { %v1575_v42 = vpack.c.bf16 %v1552_v41, %v1551_v40 }
 0x213   : > { %2575 = vmatprep.mubr.bf16.mxu1 %v1575_v42 }
 0x214   : > { %2576 = vmatmul.mubr.bf16.gmra.mxu1 %v1576_v44 }
 0x216   : > { %v2533_v45 = vpop.f32.mrf.mxu0 }
 0x217   : > { %v1497_v50 = vadd.f32 %v2533_v45, %v3185_v39 }
 0x218   : > { %v1488_v46 = vpop.f32.mrf.mxu0 }
 0x219   : > { %v1489_v48 = vadd.f32 %v3185_v39, %v1488_v46  ;;  %v1557_v56 = vmax.f32 %v1497_v50, 0.0 }
 0x21a   : > { %v2534_v47 = vpop.f32.mrf.mxu0 }
 0x21b   : > { %v1500_v49 = vadd.f32 %v2534_v47, %v3185_v39  ;;  %v1555_v54 = vmax.f32 %v1489_v48, 0.0 }
 0x21c   : > { %v1491_v51 = vpop.f32.mrf.mxu0 }
 0x21d   : > { %v1492_v52 = vadd.f32 %v3185_v39, %v1491_v51  ;;  %v1558_v53 = vmax.f32 %v1500_v49, 0.0 }
 0x21f   : > { %v1556_v55 = vmax.f32 %v1492_v52, 0.0  ;;  %v1578_v58 = vpack.c.bf16 %v1558_v53, %v1557_v56 }
 0x221   : > { %v1577_v57 = vpack.c.bf16 %v1556_v55, %v1555_v54 }
 0x223   : > { %2579 = vmatprep.mubr.bf16.mxu1 %v1577_v57 }
 0x224   : > { %2580 = vmatmul.mubr.bf16.gmra.mxu1 %v1578_v58 }
 0x226   : > { %v2537_v59 = vpop.f32.mrf.mxu0 }
 0x227   : > { %v1513_v0 = vadd.f32 %v2537_v59, %v3185_v39 }
 0x228   : > { %v1504_v60 = vpop.f32.mrf.mxu0 }
 0x229   : > { %v1505_v62 = vadd.f32 %v3185_v39, %v1504_v60  ;;  %v1561_v6 = vmax.f32 %v1513_v0, 0.0 }
 0x22a   : > { %v2538_v61 = vpop.f32.mrf.mxu0 }
 0x22b   : > { %v1516_v63 = vadd.f32 %v2538_v61, %v3185_v39  ;;  %v1559_v4 = vmax.f32 %v1505_v62, 0.0 }
 0x22c   : > { %v1507_v1 = vpop.f32.mrf.mxu0 }
 0x22d   : > { %v1508_v2 = vadd.f32 %v3185_v39, %v1507_v1  ;;  %v1562_v3 = vmax.f32 %v1516_v63, 0.0 }
 0x22f   : > { %v1560_v5 = vmax.f32 %v1508_v2, 0.0  ;;  %v1580_v8 = vpack.c.bf16 %v1562_v3, %v1561_v6 }
 0x231   : > { %v1579_v7 = vpack.c.bf16 %v1560_v5, %v1559_v4 }
 0x233   : > { %2583 = vmatprep.mubr.bf16.mxu1 %v1579_v7 }
 0x234   : > { %2584 = vmatmul.mubr.bf16.gmra.mxu1 %v1580_v8 }
 0x236   : > { %v2541_v9 = vpop.f32.mrf.mxu0 }
 0x237   : > { %v1529_v14 = vadd.f32 %v2541_v9, %v3185_v39 }
 0x238   : > { %v1520_v10 = vpop.f32.mrf.mxu0 }
 0x239   : > { %v1521_v12 = vadd.f32 %v3185_v39, %v1520_v10  ;;  %v1565_v20 = vmax.f32 %v1529_v14, 0.0 }
 0x23a   : > { %v2542_v11 = vpop.f32.mrf.mxu0 }
 0x23b   : > { %v1532_v13 = vadd.f32 %v2542_v11, %v3185_v39  ;;  %v1563_v18 = vmax.f32 %v1521_v12, 0.0 }
 0x23c   : > { %v1523_v15 = vpop.f32.mrf.mxu0 }
 0x23d   : > { %v1524_v16 = vadd.f32 %v3185_v39, %v1523_v15  ;;  %v1566_v17 = vmax.f32 %v1532_v13, 0.0 }
 0x23f   : > { %v1564_v19 = vmax.f32 %v1524_v16, 0.0  ;;  %v1582_v22 = vpack.c.bf16 %v1566_v17, %v1565_v20 }
 0x241   : > { %v1581_v21 = vpack.c.bf16 %v1564_v19, %v1563_v18 }
 0x243   : > { %2587 = vmatprep.mubr.bf16.mxu1 %v1581_v21 }
 0x244   : > { %2588 = vmatmul.mubr.bf16.gmra.mxu1 %v1582_v22 }
 0x294   : > { %v2561_v24 = vpop.f32.mrf.mxu1 }
 0x295   : > { %v1697_v25 = vadd.f32 %v2561_v24, %v3222_v23 }
 0x296   : > { %v1688_v26 = vpop.f32.mrf.mxu1 }
 0x297   : > { %v1817_v27 = vsub.f32 0.0, %v1697_v25  ;;  %v1689_v39 = vadd.f32 %v3222_v23, %v1688_v26 }
 0x298   : > { %v2562_v28 = vpop.f32.mrf.mxu1 }
 0x299   : > { %v1851_v29 = vmul.f32 1.442695, %v1817_v27  ;;  %v1815_v30 = vsub.f32 0.0, %v1689_v39  ;;  %v1700_v31 = vadd.f32 %v2562_v28, %v3222_v23 }
 0x29a   : > { %v1691_v32 = vpop.f32.mrf.mxu1 }
 0x29b   : > { %2743 = vpow2.f32 %v1851_v29  ;;  %v1847_v33 = vmul.f32 1.442695, %v1815_v30  ;;  %v1818_v34 = vsub.f32 0.0, %v1700_v31  ;;  %v1692_v35 = vadd.f32 %v3222_v23, %v1691_v32 }
 0x29d   : > { %2745 = vpow2.f32 %v1847_v33  ;;  %v1853_v36 = vmul.f32 1.442695, %v1818_v34  ;;  %v1816_v37 = vsub.f32 0.0, %v1692_v35 }
 0x29f   : > { %2747 = vpow2.f32 %v1853_v36  ;;  %v1849_v38 = vmul.f32 1.442695, %v1816_v37 }
 0x2a1   : > { %2749 = vpow2.f32 %v1849_v38 }
 0x2a4   : > { %v2565_v40 = vpop.f32.mrf.mxu1 }
 0x2a5   : > { %v1713_v41 = vadd.f32 %v2565_v40, %v3222_v23 }
 0x2a6   : > { %v1704_v43 = vpop.f32.mrf.mxu1 }
 0x2a7   : > { %v1821_v42 = vsub.f32 0.0, %v1713_v41  ;;  %v1705_v44 = vadd.f32 %v3222_v23, %v1704_v43 }
 0x2a8   : > { %v2744_v45 = vpop.eup %2743  ;;  %v2566_v46 = vpop.f32.mrf.mxu1 }
 0x2a9   : > { %v1913_v47 = vadd.f32 1.0, %v2744_v45  ;;  %v1859_v48 = vmul.f32 1.442695, %v1821_v42  ;;  %v1819_v49 = vsub.f32 0.0, %v1705_v44  ;;  %v1716_v50 = vadd.f32 %v2566_v46, %v3222_v23 }
 0x2aa   : > { %v2746_v51 = vpop.eup %2745  ;;  %v1707_v52 = vpop.f32.mrf.mxu1 }
 0x2ab   : > { %2751 = vrcp.f32 %v1913_v47  ;;  %v1911_v53 = vadd.f32 1.0, %v2746_v51  ;;  %v1855_v54 = vmul.f32 1.442695, %v1819_v49  ;;  %v1822_v55 = vsub.f32 0.0, %v1716_v50 }
 0x2ac   : > { %v2748_v56 = vpop.eup %2747  ;;  %2753 = vpow2.f32 %v1859_v48  ;;  %v1708_v57 = vadd.f32 %v3222_v23, %v1707_v52 }
 0x2ad   : > { %2755 = vrcp.f32 %v1911_v53  ;;  %v1914_v58 = vadd.f32 1.0, %v2748_v56  ;;  %v1861_v59 = vmul.f32 1.442695, %v1822_v55 }
 0x2ae   : > { %v2750_v60 = vpop.eup %2749  ;;  %2757 = vpow2.f32 %v1855_v54  ;;  %v1820_v61 = vsub.f32 0.0, %v1708_v57 }
 0x2af   : > { %2759 = vrcp.f32 %v1914_v58  ;;  %v1912_v62 = vadd.f32 1.0, %v2750_v60 }
 0x2b0   : > { %2761 = vpow2.f32 %v1861_v59  ;;  %v1857_v63 = vmul.f32 1.442695, %v1820_v61 }
 0x2b1   : > { %2763 = vrcp.f32 %v1912_v62 }
 0x2b2   : > { %2765 = vpow2.f32 %v1857_v63 }
 0x2b4   : > { %v2569_v0 = vpop.f32.mrf.mxu1 }
 0x2b5   : > { %v1729_v1 = vadd.f32 %v2569_v0, %v3222_v23 }
 0x2b6   : > { %v1720_v2 = vpop.f32.mrf.mxu1 }
 0x2b7   : > { %v1825_v3 = vsub.f32 0.0, %v1729_v1  ;;  %v1721_v4 = vadd.f32 %v3222_v23, %v1720_v2 }
 0x2b8   : > { %v2752_v5 = vpop.eup %2751  ;;  %v2570_v6 = vpop.f32.mrf.mxu1 }
 0x2b9   : > { %v2754_v7 = vpop.eup %2753  ;;  %2009 = vst [vmem:[%s3237_s30 + $0x10] sm:$0xff] %v2752_v5  ;;  %v1867_v8 = vmul.f32 1.442695, %v1825_v3  ;;  %v1823_v9 = vsub.f32 0.0, %v1721_v4  ;;  %v1732_v10 = vadd.f32 %v2570_v6, %v3222_v23 }
 0x2ba   : > { %v2756_v11 = vpop.eup %2755  ;;  %v1917_v12 = vadd.f32 1.0, %v2754_v7  ;;  %v1723_v13 = vpop.f32.mrf.mxu1 }
 0x2bb   : > { %v2758_v14 = vpop.eup %2757  ;;  %2007 = vst [vmem:[%s3237_s30] sm:$0xff] %v2756_v11  ;;  %2767 = vpow2.f32 %v1867_v8  ;;  %v1863_v15 = vmul.f32 1.442695, %v1823_v9  ;;  %v1826_v16 = vsub.f32 0.0, %v1732_v10  ;;  %v1724_v17 = vadd.f32 %v3222_v23, %v1723_v13 }
 0x2bc   : > { %v2760_v18 = vpop.eup %2759  ;;  %2769 = vrcp.f32 %v1917_v12  ;;  %v1915_v19 = vadd.f32 1.0, %v2758_v14 }
 0x2bd   : > { %v2762_v20 = vpop.eup %2761  ;;  %2010 = vst [vmem:[%s3237_s30 + $0x18] sm:$0xff] %v2760_v18  ;;  %2771 = vpow2.f32 %v1863_v15  ;;  %v1869_v21 = vmul.f32 1.442695, %v1826_v16  ;;  %v1824_v22 = vsub.f32 0.0, %v1724_v17 }
 0x2be   : > { %v2764_v24 = vpop.eup %2763  ;;  %2773 = vrcp.f32 %v1915_v19  ;;  %v1918_v25 = vadd.f32 1.0, %v2762_v20 }
 0x2bf   : > { %v2766_v26 = vpop.eup %2765  ;;  %2008 = vst [vmem:[%s3237_s30 + $0x8] sm:$0xff] %v2764_v24  ;;  %2775 = vpow2.f32 %v1869_v21  ;;  %v1865_v27 = vmul.f32 1.442695, %v1824_v22 }
 0x2c0   : > { %2777 = vrcp.f32 %v1918_v25  ;;  %v1916_v39 = vadd.f32 1.0, %v2766_v26 }
 0x2c1   : > { %2779 = vpow2.f32 %v1865_v27 }
 0x2c2   : > { %2781 = vrcp.f32 %v1916_v39 }
 0x2c4   : > { %v2573_v28 = vpop.f32.mrf.mxu1 }
 0x2c5   : > { %v1745_v29 = vadd.f32 %v2573_v28, %v3222_v23 }
 0x2c6   : > { %v1736_v30 = vpop.f32.mrf.mxu1 }
 0x2c7   : > { %v1829_v31 = vsub.f32 0.0, %v1745_v29  ;;  %v1737_v32 = vadd.f32 %v3222_v23, %v1736_v30 }
 0x2c8   : > { %v2768_v33 = vpop.eup %2767  ;;  %v2574_v34 = vpop.f32.mrf.mxu1 }
 0x2c9   : > { %v2770_v35 = vpop.eup %2769  ;;  %v1921_v36 = vadd.f32 1.0, %v2768_v33  ;;  %v1875_v37 = vmul.f32 1.442695, %v1829_v31  ;;  %v1827_v38 = vsub.f32 0.0, %v1737_v32  ;;  %v1748_v40 = vadd.f32 %v2574_v34, %v3222_v23 }
 0x2ca   : > { %v2772_v41 = vpop.eup %2771  ;;  %2013 = vst [vmem:[%s3237_s30 + $0x30] sm:$0xff] %v2770_v35  ;;  %v1739_v43 = vpop.f32.mrf.mxu1 }
 0x2cb   : > { %v2774_v42 = vpop.eup %2773  ;;  %2783 = vrcp.f32 %v1921_v36  ;;  %v1919_v44 = vadd.f32 1.0, %v2772_v41  ;;  %v1871_v45 = vmul.f32 1.442695, %v1827_v38  ;;  %v1830_v46 = vsub.f32 0.0, %v1748_v40 }
 0x2cc   : > { %v2776_v47 = vpop.eup %2775  ;;  %2011 = vst [vmem:[%s3237_s30 + $0x20] sm:$0xff] %v2774_v42  ;;  %2785 = vpow2.f32 %v1875_v37  ;;  %v1740_v48 = vadd.f32 %v3222_v23, %v1739_v43 }
 0x2cd   : > { %v2778_v49 = vpop.eup %2777  ;;  %2787 = vrcp.f32 %v1919_v44  ;;  %v1922_v50 = vadd.f32 1.0, %v2776_v47  ;;  %v1877_v51 = vmul.f32 1.442695, %v1830_v46 }
 0x2ce   : > { %v2780_v52 = vpop.eup %2779  ;;  %2014 = vst [vmem:[%s3237_s30 + $0x38] sm:$0xff] %v2778_v49  ;;  %2789 = vpow2.f32 %v1871_v45  ;;  %v1828_v53 = vsub.f32 0.0, %v1740_v48 }
 0x2cf   : > { %v2782_v54 = vpop.eup %2781  ;;  %2791 = vrcp.f32 %v1922_v50  ;;  %v1920_v55 = vadd.f32 1.0, %v2780_v52 }
 0x2d0   : > { %2012 = vst [vmem:[%s3237_s30 + $0x28] sm:$0xff] %v2782_v54  ;;  %2793 = vpow2.f32 %v1877_v51  ;;  %v1873_v56 = vmul.f32 1.442695, %v1828_v53 }
 0x2d1   : > { %2795 = vrcp.f32 %v1920_v55 }
 0x2d2   : > { %2797 = vpow2.f32 %v1873_v56 }
 0x2d4   : > { %v2577_v57 = vpop.f32.mrf.mxu1 }
 0x2d5   : > { %v1761_v58 = vadd.f32 %v2577_v57, %v3222_v23 }
 0x2d6   : > { %v1752_v59 = vpop.f32.mrf.mxu1 }
 0x2d7   : > { %v1833_v60 = vsub.f32 0.0, %v1761_v58  ;;  %v1753_v61 = vadd.f32 %v3222_v23, %v1752_v59 }
 0x2d8   : > { %v2784_v62 = vpop.eup %2783  ;;  %v2578_v63 = vpop.f32.mrf.mxu1 }
 0x2d9   : > { %v2786_v0 = vpop.eup %2785  ;;  %2017 = vst [vmem:[%s3237_s30 + $0x50] sm:$0xff] %v2784_v62  ;;  %v1883_v1 = vmul.f32 1.442695, %v1833_v60  ;;  %v1831_v2 = vsub.f32 0.0, %v1753_v61  ;;  %v1764_v3 = vadd.f32 %v2578_v63, %v3222_v23 }
 0x2da   : > { %v2788_v4 = vpop.eup %2787  ;;  %v1925_v5 = vadd.f32 1.0, %v2786_v0  ;;  %v1755_v6 = vpop.f32.mrf.mxu1 }
 0x2db   : > { %v2790_v7 = vpop.eup %2789  ;;  %2015 = vst [vmem:[%s3237_s30 + $0x40] sm:$0xff] %v2788_v4  ;;  %2799 = vpow2.f32 %v1883_v1  ;;  %v1879_v8 = vmul.f32 1.442695, %v1831_v2  ;;  %v1834_v9 = vsub.f32 0.0, %v1764_v3  ;;  %v1756_v10 = vadd.f32 %v3222_v23, %v1755_v6 }
 0x2dc   : > { %v2792_v11 = vpop.eup %2791  ;;  %2801 = vrcp.f32 %v1925_v5  ;;  %v1923_v12 = vadd.f32 1.0, %v2790_v7 }
 0x2dd   : > { %v2794_v13 = vpop.eup %2793  ;;  %2018 = vst [vmem:[%s3237_s30 + $0x58] sm:$0xff] %v2792_v11  ;;  %2803 = vpow2.f32 %v1879_v8  ;;  %v1885_v14 = vmul.f32 1.442695, %v1834_v9  ;;  %v1832_v15 = vsub.f32 0.0, %v1756_v10 }
 0x2de   : > { %v2796_v16 = vpop.eup %2795  ;;  %2805 = vrcp.f32 %v1923_v12  ;;  %v1926_v17 = vadd.f32 1.0, %v2794_v13 }
 0x2df   : > { %v2798_v18 = vpop.eup %2797  ;;  %2016 = vst [vmem:[%s3237_s30 + $0x48] sm:$0xff] %v2796_v16  ;;  %2807 = vpow2.f32 %v1885_v14  ;;  %v1881_v19 = vmul.f32 1.442695, %v1832_v15 }
 0x2e0   : > { %2809 = vrcp.f32 %v1926_v17  ;;  %v1924_v20 = vadd.f32 1.0, %v2798_v18 }
 0x2e1   : > { %2811 = vpow2.f32 %v1881_v19 }
 0x2e2   : > { %2813 = vrcp.f32 %v1924_v20 }
 0x2e4   : > { %v2581_v21 = vpop.f32.mrf.mxu1 }
 0x2e5   : > { %v1777_v22 = vadd.f32 %v2581_v21, %v3222_v23 }
 0x2e6   : > { %v1768_v24 = vpop.f32.mrf.mxu1 }
 0x2e7   : > { %v1837_v25 = vsub.f32 0.0, %v1777_v22  ;;  %v1769_v26 = vadd.f32 %v3222_v23, %v1768_v24 }
 0x2e8   : > { %v2800_v27 = vpop.eup %2799  ;;  %v2582_v39 = vpop.f32.mrf.mxu1 }
 0x2e9   : > { %v2802_v28 = vpop.eup %2801  ;;  %v1929_v29 = vadd.f32 1.0, %v2800_v27  ;;  %v1891_v30 = vmul.f32 1.442695, %v1837_v25  ;;  %v1835_v31 = vsub.f32 0.0, %v1769_v26  ;;  %v1780_v32 = vadd.f32 %v2582_v39, %v3222_v23 }
 0x2ea   : > { %v2804_v33 = vpop.eup %2803  ;;  %2021 = vst [vmem:[%s3237_s30 + $0x70] sm:$0xff] %v2802_v28  ;;  %v1771_v34 = vpop.f32.mrf.mxu1 }
 0x2eb   : > { %v2806_v35 = vpop.eup %2805  ;;  %2815 = vrcp.f32 %v1929_v29  ;;  %v1927_v36 = vadd.f32 1.0, %v2804_v33  ;;  %v1887_v37 = vmul.f32 1.442695, %v1835_v31  ;;  %v1838_v38 = vsub.f32 0.0, %v1780_v32 }
 0x2ec   : > { %v2808_v40 = vpop.eup %2807  ;;  %2019 = vst [vmem:[%s3237_s30 + $0x60] sm:$0xff] %v2806_v35  ;;  %2817 = vpow2.f32 %v1891_v30  ;;  %v1772_v41 = vadd.f32 %v3222_v23, %v1771_v34 }
 0x2ed   : > { %v2810_v43 = vpop.eup %2809  ;;  %2819 = vrcp.f32 %v1927_v36  ;;  %v1930_v42 = vadd.f32 1.0, %v2808_v40  ;;  %v1893_v44 = vmul.f32 1.442695, %v1838_v38 }
 0x2ee   : > { %v2812_v45 = vpop.eup %2811  ;;  %2022 = vst [vmem:[%s3237_s30 + $0x78] sm:$0xff] %v2810_v43  ;;  %2821 = vpow2.f32 %v1887_v37  ;;  %v1836_v46 = vsub.f32 0.0, %v1772_v41 }
 0x2ef   : > { %v2814_v47 = vpop.eup %2813  ;;  %2823 = vrcp.f32 %v1930_v42  ;;  %v1928_v48 = vadd.f32 1.0, %v2812_v45 }
 0x2f0   : > { %2020 = vst [vmem:[%s3237_s30 + $0x68] sm:$0xff] %v2814_v47  ;;  %2825 = vpow2.f32 %v1893_v44  ;;  %v1889_v49 = vmul.f32 1.442695, %v1836_v46 }
 0x2f1   : > { %2827 = vrcp.f32 %v1928_v48 }
 0x2f2   : > { %2829 = vpow2.f32 %v1889_v49 }
 0x2f4   : > { %v2585_v50 = vpop.f32.mrf.mxu1 }
 0x2f5   : > { %v1793_v51 = vadd.f32 %v2585_v50, %v3222_v23 }
 0x2f6   : > { %v1784_v52 = vpop.f32.mrf.mxu1 }
 0x2f7   : > { %v1841_v53 = vsub.f32 0.0, %v1793_v51  ;;  %v1785_v54 = vadd.f32 %v3222_v23, %v1784_v52 }
 0x2f8   : > { %v2816_v55 = vpop.eup %2815  ;;  %v2586_v56 = vpop.f32.mrf.mxu1 }
 0x2f9   : > { %v2818_v57 = vpop.eup %2817  ;;  %2025 = vst [vmem:[%s3237_s30 + $0x90] sm:$0xff] %v2816_v55  ;;  %v1899_v58 = vmul.f32 1.442695, %v1841_v53  ;;  %v1839_v59 = vsub.f32 0.0, %v1785_v54  ;;  %v1796_v60 = vadd.f32 %v2586_v56, %v3222_v23 }
 0x2fa   : > { %v2820_v61 = vpop.eup %2819  ;;  %v1933_v62 = vadd.f32 1.0, %v2818_v57  ;;  %v1787_v63 = vpop.f32.mrf.mxu1 }
 0x2fb   : > { %v2822_v0 = vpop.eup %2821  ;;  %2023 = vst [vmem:[%s3237_s30 + $0x80] sm:$0xff] %v2820_v61  ;;  %2831 = vpow2.f32 %v1899_v58  ;;  %v1895_v1 = vmul.f32 1.442695, %v1839_v59  ;;  %v1842_v2 = vsub.f32 0.0, %v1796_v60  ;;  %v1788_v3 = vadd.f32 %v3222_v23, %v1787_v63 }
 0x2fc   : > { %v2824_v4 = vpop.eup %2823  ;;  %2833 = vrcp.f32 %v1933_v62  ;;  %v1931_v5 = vadd.f32 1.0, %v2822_v0 }
 0x2fd   : > { %v2826_v6 = vpop.eup %2825  ;;  %2026 = vst [vmem:[%s3237_s30 + $0x98] sm:$0xff] %v2824_v4  ;;  %2835 = vpow2.f32 %v1895_v1  ;;  %v1901_v7 = vmul.f32 1.442695, %v1842_v2  ;;  %v1840_v8 = vsub.f32 0.0, %v1788_v3 }
 0x2fe   : > { %v2828_v9 = vpop.eup %2827  ;;  %2837 = vrcp.f32 %v1931_v5  ;;  %v1934_v10 = vadd.f32 1.0, %v2826_v6 }
 0x2ff   : > { %v2830_v11 = vpop.eup %2829  ;;  %2024 = vst [vmem:[%s3237_s30 + $0x88] sm:$0xff] %v2828_v9  ;;  %2839 = vpow2.f32 %v1901_v7  ;;  %v1897_v12 = vmul.f32 1.442695, %v1840_v8 }
 0x300   : > { %2841 = vrcp.f32 %v1934_v10  ;;  %v1932_v13 = vadd.f32 1.0, %v2830_v11 }
 0x301   : > { %2843 = vpow2.f32 %v1897_v12 }
 0x302   : > { %2845 = vrcp.f32 %v1932_v13 }
 0x304   : > { %v2589_v14 = vpop.f32.mrf.mxu1 }
 0x305   : > { %v1809_v15 = vadd.f32 %v2589_v14, %v3222_v23 }
 0x306   : > { %v1800_v16 = vpop.f32.mrf.mxu1 }
 0x307   : > { %v1845_v17 = vsub.f32 0.0, %v1809_v15  ;;  %v1801_v18 = vadd.f32 %v3222_v23, %v1800_v16 }
 0x308   : > { %v2832_v19 = vpop.eup %2831  ;;  %v2590_v20 = vpop.f32.mrf.mxu1 }
 0x309   : > { %v2834_v21 = vpop.eup %2833  ;;  %v1937_v22 = vadd.f32 1.0, %v2832_v19  ;;  %v1907_v24 = vmul.f32 1.442695, %v1845_v17  ;;  %v1843_v25 = vsub.f32 0.0, %v1801_v18  ;;  %v1812_v26 = vadd.f32 %v2590_v20, %v3222_v23 }
 0x30a   : > { %v2836_v27 = vpop.eup %2835  ;;  %2029 = vst [vmem:[%s3237_s30 + $0xb0] sm:$0xff] %v2834_v21  ;;  %v1803_v39 = vpop.f32.mrf.mxu1 }
 0x30b   : > { %v2838_v28 = vpop.eup %2837  ;;  %2847 = vrcp.f32 %v1937_v22  ;;  %v1935_v29 = vadd.f32 1.0, %v2836_v27  ;;  %v1903_v30 = vmul.f32 1.442695, %v1843_v25  ;;  %v1846_v31 = vsub.f32 0.0, %v1812_v26 }
 0x30c   : > { %v2840_v32 = vpop.eup %2839  ;;  %2027 = vst [vmem:[%s3237_s30 + $0xa0] sm:$0xff] %v2838_v28  ;;  %2849 = vpow2.f32 %v1907_v24  ;;  %v1804_v33 = vadd.f32 %v3222_v23, %v1803_v39 }
 0x30d   : > { %v2842_v34 = vpop.eup %2841  ;;  %2851 = vrcp.f32 %v1935_v29  ;;  %v1938_v35 = vadd.f32 1.0, %v2840_v32  ;;  %v1909_v36 = vmul.f32 1.442695, %v1846_v31 }
 0x30e   : > { %v2844_v37 = vpop.eup %2843  ;;  %2030 = vst [vmem:[%s3237_s30 + $0xb8] sm:$0xff] %v2842_v34  ;;  %2853 = vpow2.f32 %v1903_v30  ;;  %v1844_v38 = vsub.f32 0.0, %v1804_v33 }
 0x30f   : > { %v2846_v40 = vpop.eup %2845  ;;  %2855 = vrcp.f32 %v1938_v35  ;;  %v1936_v41 = vadd.f32 1.0, %v2844_v37 }
 0x310   : > { %2028 = vst [vmem:[%s3237_s30 + $0xa8] sm:$0xff] %v2846_v40  ;;  %2857 = vpow2.f32 %v1909_v36  ;;  %v1905_v43 = vmul.f32 1.442695, %v1844_v38 }
 0x311   : > { %2859 = vrcp.f32 %v1936_v41 }
 0x312   : > { %2861 = vpow2.f32 %v1905_v43 }
 0x318   : > { %v2848_v23 = vpop.eup %2847 }
 0x319   : > { %v2850_v42 = vpop.eup %2849  ;;  %2033 = vst [vmem:[%s3237_s30 + $0xd0] sm:$0xff] %v2848_v23 }
 0x31a   : > { %v2852_v44 = vpop.eup %2851  ;;  %v1941_v45 = vadd.f32 1.0, %v2850_v42 }
 0x31b   : > { %v2854_v46 = vpop.eup %2853  ;;  %2031 = vst [vmem:[%s3237_s30 + $0xc0] sm:$0xff] %v2852_v44 }
 0x31c   : > { %v2856_v47 = vpop.eup %2855  ;;  %2863 = vrcp.f32 %v1941_v45  ;;  %v1939_v48 = vadd.f32 1.0, %v2854_v46 }
 0x31d   : > { %v2858_v49 = vpop.eup %2857  ;;  %2034 = vst [vmem:[%s3237_s30 + $0xd8] sm:$0xff] %v2856_v47 }
 0x31e   : > { %v2860_v50 = vpop.eup %2859  ;;  %2865 = vrcp.f32 %v1939_v48  ;;  %v1942_v51 = vadd.f32 1.0, %v2858_v49 }
 0x31f   : > { %v2862_v52 = vpop.eup %2861  ;;  %2032 = vst [vmem:[%s3237_s30 + $0xc8] sm:$0xff] %v2860_v50 }
 0x320   : > { %2867 = vrcp.f32 %v1942_v51  ;;  %v1940_v53 = vadd.f32 1.0, %v2862_v52 }
 0x322   : > { %2869 = vrcp.f32 %v1940_v53 }
 0x329   : > { %v2864_v54 = vpop.eup %2863 }
 0x32a   : > { %2037 = vst [vmem:[%s3237_s30 + $0xf0] sm:$0xff] %v2864_v54 }
 0x32b   : > { %v2866_v55 = vpop.eup %2865 }
 0x32c   : > { %2035 = vst [vmem:[%s3237_s30 + $0xe0] sm:$0xff] %v2866_v55 }
 0x32d   : > { %v2868_v56 = vpop.eup %2867 }
 0x32e   : > { %2038 = vst [vmem:[%s3237_s30 + $0xf8] sm:$0xff] %v2868_v56 }
 0x32f   : > { %v2870_v57 = vpop.eup %2869 }
 0x330   : > { %2036 = vst [vmem:[%s3237_s30 + $0xe8] sm:$0xff] %v2870_v57 }
 0x331 PF: > { %s17_s24 = sadd.s32 1, %s2877_s24  }
 0x332   : > { %p14_p4 = scmp.ge.s32.totalorder %s17_s24, 4  }
 0x334   :  { %16 = sbr.rel (!%p14_p4) target bundleno = 1 (0x1), region = 78 }

</bundles_post_ra>
